<compile_context>
chip_gen: v7x
topology: tpu7x:2x2x1
jax: 0.10.0
libtpu: 0.0.40
codegen_flags: <defaults>
</compile_context>

<pallas_src>
import functools

import jax
import jax.numpy as jnp
from jax.experimental import pallas as pl
from jax.experimental.pallas import tpu as pltpu


def _round_up(x, m):
    return ((x + m - 1) // m) * m


# ----------------------------------------------------------------------------
# Pallas kernel: fused 3x3 conv (in-kernel tap gather) + BN affine + ReLU
# ----------------------------------------------------------------------------
def _conv3x3_bn_relu_kernel(x_ref, w_ref, s_ref, b_ref, o_ref, *, cin, ho, wo):
    """One (batch-element, cout-tile) block.

    x_ref: (1, Ho+2, Wo+2, Cin)  bf16  padded input image
    w_ref: (9, Cin, TN)          bf16  tap-major packed conv weights
    s_ref: (1, TN)               f32   folded BN scale
    b_ref: (1, TN)               f32   folded BN bias
    o_ref: (1, Ho, Wo, TN)       f32
    """
    tn = o_ref.shape[-1]
    # Upcast once; tap slices / reshapes use the plain f32 (8,128) tiling.
    xb = x_ref[0].astype(jnp.float32)                        # (Ho+2, Wo+2, Cin)
    acc = jnp.zeros((ho * wo, tn), jnp.float32)
    for ky in range(3):
        for kx in range(3):
            patch = xb[ky:ky + ho, kx:kx + wo, :]            # (Ho, Wo, Cin)
            patch = patch.reshape(ho * wo, cin).astype(jnp.bfloat16)
            acc = acc + jnp.dot(patch, w_ref[ky * 3 + kx],
                                preferred_element_type=jnp.float32)
    y = acc * s_ref[...] + b_ref[...]                        # BN affine (f32)
    y = jnp.maximum(y, 0.0)                                  # ReLU
    o_ref[0] = y.reshape(ho, wo, tn)


# ----------------------------------------------------------------------------
# One-time parameter preparation (weight packing + BN folding)
# ----------------------------------------------------------------------------
def prepare_params(w_oihw, gamma, beta, mean, var, eps=1e-5):
    cout, cin, kh, kw = w_oihw.shape
    assert (kh, kw) == (3, 3)
    cout_p = _round_up(cout, 128)                            # lane-dense N
    # (O,I,kh,kw) -> (kh,kw,I,O) -> (9, I, O); pad O; bf16 for the MXU.
    w = jnp.transpose(w_oihw, (2, 3, 1, 0)).reshape(kh * kw, cin, cout)
    w = jnp.pad(w, ((0, 0), (0, 0), (0, cout_p - cout))).astype(jnp.bfloat16)
    s = gamma / jnp.sqrt(var + eps)
    b = beta - mean * s
    s = jnp.pad(s, (0, cout_p - cout)).reshape(1, cout_p).astype(jnp.float32)
    b = jnp.pad(b, (0, cout_p - cout)).reshape(1, cout_p).astype(jnp.float32)
    return {'w': w, 'scale': s, 'bias': b}


# ----------------------------------------------------------------------------
# Forward pass (NCHW in / NCHW out, like the PyTorch module)
# ----------------------------------------------------------------------------
def conv_block_forward(params, x_nchw, *, out_channels):
    x = jnp.transpose(x_nchw, (0, 2, 3, 1))                  # NCHW -> NHWC
    n, h, w_sp, cin = x.shape
    ho, wo = h, w_sp                                         # k=3, s=1, p=1
    xp = jnp.pad(x, ((0, 0), (1, 1), (1, 1), (0, 0))).astype(jnp.bfloat16)
    hp, wp = h + 2, w_sp + 2

    wt = params['w']                                         # (9, Cin, Cout_p)
    cout_p = wt.shape[-1]
    tn = 128                                                 # lane-dense tile
    grid = (n, cout_p // tn)

    kernel = functools.partial(_conv3x3_bn_relu_kernel, cin=cin, ho=ho, wo=wo)

    out = pl.pallas_call(
        kernel,
        out_shape=jax.ShapeDtypeStruct((n, ho, wo, cout_p), jnp.float32),
        grid=grid,
        in_specs=[
            pl.BlockSpec((1, hp, wp, cin), lambda i, j: (i, 0, 0, 0)),
            pl.BlockSpec((9, cin, tn), lambda i, j: (0, 0, j)),
            pl.BlockSpec((1, tn), lambda i, j: (0, j)),
            pl.BlockSpec((1, tn), lambda i, j: (0, j)),
        ],
        out_specs=pl.BlockSpec((1, ho, wo, tn), lambda i, j: (i, 0, 0, j)),
        compiler_params=pltpu.CompilerParams(
            dimension_semantics=("parallel", "parallel"),
            vmem_limit_bytes=32 * 1024 * 1024,
        ),
    )(xp, wt, params['scale'], params['bias'])

    out = out[..., :out_channels]                            # drop Cout padding
    return jnp.transpose(out, (0, 3, 1, 2))                  # NHWC -> NCHW


# ----------------------------------------------------------------------------
# Plain-JAX reference (same bf16-operand / f32-accumulate math) for checking
# ----------------------------------------------------------------------------
def _reference(x_nchw, w_oihw, gamma, beta, mean, var, eps=1e-5):
    y = jax.lax.conv_general_dilated(
        x_nchw.astype(jnp.bfloat16), w_oihw.astype(jnp.bfloat16),
        window_strides=(1, 1), padding=((1, 1), (1, 1)),
        dimension_numbers=('NCHW', 'OIHW', 'NCHW'),
        preferred_element_type=jnp.float32)
    s = (gamma / jnp.sqrt(var + eps)).reshape(1, -1, 1, 1)
    b = (beta - mean * gamma / jnp.sqrt(var + eps)).reshape(1, -1, 1, 1)
    return jnp.maximum(y * s + b, 0.0)


if __name__ == "__main__":
    key = jax.random.PRNGKey(0)
    batch, in_channels, out_channels, spatial = 2, 4, 8, 16

    k_w, k_g, k_b, k_m, k_v, k_x = (jax.random.fold_in(key, i) for i in range(6))
    fan_in = in_channels * 9
    w = jax.random.normal(k_w, (out_channels, in_channels, 3, 3),
                          jnp.float32) * (2.0 / fan_in) ** 0.5
    gamma = 0.5 + jax.random.uniform(k_g, (out_channels,), jnp.float32)
    beta = 0.1 * jax.random.normal(k_b, (out_channels,), jnp.float32)
    mean = 0.1 * jax.random.normal(k_m, (out_channels,), jnp.float32)
    var = 0.5 + jax.random.uniform(k_v, (out_channels,), jnp.float32)
    x = jax.random.normal(k_x, (batch, in_channels, spatial, spatial),
                          jnp.float32)

    params = prepare_params(w, gamma, beta, mean, var)

    fwd = jax.jit(conv_block_forward, static_argnames=("out_channels",))
    out = fwd(params, x, out_channels=out_channels)
    jax.block_until_ready(out)

    assert out.shape == (batch, out_channels, spatial, spatial), out.shape
    assert bool(jnp.all(jnp.isfinite(out)))

    ref = _reference(x, w, gamma, beta, mean, var)
    err = float(jnp.max(jnp.abs(out - ref)))
    assert err < 1e-2, f"max abs error vs reference: {err}"

    print("KERNEL_OK")
</pallas_src>

<mosaic_0001>
module attributes {stable_mosaic.version = 11 : i64} {
  func.func @_conv3x3_bn_relu_kernel(%arg0: i32, %arg1: i32, %arg2: memref<1x18x18x4xbf16, #tpu.memory_space<vmem>>, %arg3: memref<9x4x128xbf16, #tpu.memory_space<vmem>>, %arg4: memref<1x128xf32, #tpu.memory_space<vmem>>, %arg5: memref<1x128xf32, #tpu.memory_space<vmem>>, %arg6: memref<1x16x16x128xf32, #tpu.memory_space<vmem>>) attributes {dimension_semantics = [#tpu.dimension_semantics<parallel>, #tpu.dimension_semantics<parallel>], iteration_bounds = array<i64: 2, 1>, scalar_prefetch = 0 : i64, scratch_operands = 0 : i64, tpu.core_type = #tpu.core_type<tc>, window_params = [{transform_indices = @transform_0, window_bounds = array<i64: 1, 18, 18, 4>}, {transform_indices = @transform_1, window_bounds = array<i64: 9, 4, 128>}, {transform_indices = @transform_2, window_bounds = array<i64: 1, 128>}, {transform_indices = @transform_3, window_bounds = array<i64: 1, 128>}, {transform_indices = @transform_4, window_bounds = array<i64: 1, 16, 16, 128>}]} {
    %c0 = arith.constant 0 : index
    %c0_0 = arith.constant 0 : index
    %c0_1 = arith.constant 0 : index
    %c0_2 = arith.constant 0 : index
    %0 = vector.load %arg2[%c0, %c0_0, %c0_1, %c0_2] : memref<1x18x18x4xbf16, #tpu.memory_space<vmem>>, vector<1x18x18x4xbf16>
    %1 = vector.shape_cast %0 : vector<1x18x18x4xbf16> to vector<18x18x4xbf16>
    %2 = arith.extf %1 : vector<18x18x4xbf16> to vector<18x18x4xf32>
    %cst = arith.constant 0.000000e+00 : f32
    %3 = vector.broadcast %cst : f32 to vector<256x128xf32>
    %4 = vector.extract_strided_slice %2 {offsets = [0, 0, 0], sizes = [16, 16, 4], strides = [1, 1, 1]} : vector<18x18x4xf32> to vector<16x16x4xf32>
    %5 = vector.shape_cast %4 : vector<16x16x4xf32> to vector<256x4xf32>
    %6 = arith.truncf %5 : vector<256x4xf32> to vector<256x4xbf16>
    %c0_3 = arith.constant 0 : index
    %c0_4 = arith.constant 0 : index
    %c0_5 = arith.constant 0 : index
    %7 = vector.load %arg3[%c0_3, %c0_4, %c0_5] : memref<9x4x128xbf16, #tpu.memory_space<vmem>>, vector<1x4x128xbf16>
    %8 = vector.shape_cast %7 : vector<1x4x128xbf16> to vector<4x128xbf16>
    %cst_6 = arith.constant dense<0.000000e+00> : vector<256x128xf32>
    %9 = tpu.matmul %6, %8, %cst_6 {dimension_numbers = #tpu.dot_dimension_numbers<[1], [0], [0], [1], [0, 0, 1, 1], [], []>} : vector<256x4xbf16>, vector<4x128xbf16>, vector<256x128xf32> -> vector<256x128xf32>
    %10 = arith.addf %3, %9 : vector<256x128xf32>
    %11 = vector.extract_strided_slice %2 {offsets = [0, 1, 0], sizes = [16, 16, 4], strides = [1, 1, 1]} : vector<18x18x4xf32> to vector<16x16x4xf32>
    %12 = vector.shape_cast %11 : vector<16x16x4xf32> to vector<256x4xf32>
    %13 = arith.truncf %12 : vector<256x4xf32> to vector<256x4xbf16>
    %c1 = arith.constant 1 : index
    %c0_7 = arith.constant 0 : index
    %c0_8 = arith.constant 0 : index
    %14 = vector.load %arg3[%c1, %c0_7, %c0_8] : memref<9x4x128xbf16, #tpu.memory_space<vmem>>, vector<1x4x128xbf16>
    %15 = vector.shape_cast %14 : vector<1x4x128xbf16> to vector<4x128xbf16>
    %cst_9 = arith.constant dense<0.000000e+00> : vector<256x128xf32>
    %16 = tpu.matmul %13, %15, %cst_9 {dimension_numbers = #tpu.dot_dimension_numbers<[1], [0], [0], [1], [0, 0, 1, 1], [], []>} : vector<256x4xbf16>, vector<4x128xbf16>, vector<256x128xf32> -> vector<256x128xf32>
    %17 = arith.addf %10, %16 : vector<256x128xf32>
    %18 = vector.extract_strided_slice %2 {offsets = [0, 2, 0], sizes = [16, 16, 4], strides = [1, 1, 1]} : vector<18x18x4xf32> to vector<16x16x4xf32>
    %19 = vector.shape_cast %18 : vector<16x16x4xf32> to vector<256x4xf32>
    %20 = arith.truncf %19 : vector<256x4xf32> to vector<256x4xbf16>
    %c2 = arith.constant 2 : index
    %c0_10 = arith.constant 0 : index
    %c0_11 = arith.constant 0 : index
    %21 = vector.load %arg3[%c2, %c0_10, %c0_11] : memref<9x4x128xbf16, #tpu.memory_space<vmem>>, vector<1x4x128xbf16>
    %22 = vector.shape_cast %21 : vector<1x4x128xbf16> to vector<4x128xbf16>
    %cst_12 = arith.constant dense<0.000000e+00> : vector<256x128xf32>
    %23 = tpu.matmul %20, %22, %cst_12 {dimension_numbers = #tpu.dot_dimension_numbers<[1], [0], [0], [1], [0, 0, 1, 1], [], []>} : vector<256x4xbf16>, vector<4x128xbf16>, vector<256x128xf32> -> vector<256x128xf32>
    %24 = arith.addf %17, %23 : vector<256x128xf32>
    %25 = vector.extract_strided_slice %2 {offsets = [1, 0, 0], sizes = [16, 16, 4], strides = [1, 1, 1]} : vector<18x18x4xf32> to vector<16x16x4xf32>
    %26 = vector.shape_cast %25 : vector<16x16x4xf32> to vector<256x4xf32>
    %27 = arith.truncf %26 : vector<256x4xf32> to vector<256x4xbf16>
    %c3 = arith.constant 3 : index
    %c0_13 = arith.constant 0 : index
    %c0_14 = arith.constant 0 : index
    %28 = vector.load %arg3[%c3, %c0_13, %c0_14] : memref<9x4x128xbf16, #tpu.memory_space<vmem>>, vector<1x4x128xbf16>
    %29 = vector.shape_cast %28 : vector<1x4x128xbf16> to vector<4x128xbf16>
    %cst_15 = arith.constant dense<0.000000e+00> : vector<256x128xf32>
    %30 = tpu.matmul %27, %29, %cst_15 {dimension_numbers = #tpu.dot_dimension_numbers<[1], [0], [0], [1], [0, 0, 1, 1], [], []>} : vector<256x4xbf16>, vector<4x128xbf16>, vector<256x128xf32> -> vector<256x128xf32>
    %31 = arith.addf %24, %30 : vector<256x128xf32>
    %32 = vector.extract_strided_slice %2 {offsets = [1, 1, 0], sizes = [16, 16, 4], strides = [1, 1, 1]} : vector<18x18x4xf32> to vector<16x16x4xf32>
    %33 = vector.shape_cast %32 : vector<16x16x4xf32> to vector<256x4xf32>
    %34 = arith.truncf %33 : vector<256x4xf32> to vector<256x4xbf16>
    %c4 = arith.constant 4 : index
    %c0_16 = arith.constant 0 : index
    %c0_17 = arith.constant 0 : index
    %35 = vector.load %arg3[%c4, %c0_16, %c0_17] : memref<9x4x128xbf16, #tpu.memory_space<vmem>>, vector<1x4x128xbf16>
    %36 = vector.shape_cast %35 : vector<1x4x128xbf16> to vector<4x128xbf16>
    %cst_18 = arith.constant dense<0.000000e+00> : vector<256x128xf32>
    %37 = tpu.matmul %34, %36, %cst_18 {dimension_numbers = #tpu.dot_dimension_numbers<[1], [0], [0], [1], [0, 0, 1, 1], [], []>} : vector<256x4xbf16>, vector<4x128xbf16>, vector<256x128xf32> -> vector<256x128xf32>
    %38 = arith.addf %31, %37 : vector<256x128xf32>
    %39 = vector.extract_strided_slice %2 {offsets = [1, 2, 0], sizes = [16, 16, 4], strides = [1, 1, 1]} : vector<18x18x4xf32> to vector<16x16x4xf32>
    %40 = vector.shape_cast %39 : vector<16x16x4xf32> to vector<256x4xf32>
    %41 = arith.truncf %40 : vector<256x4xf32> to vector<256x4xbf16>
    %c5 = arith.constant 5 : index
    %c0_19 = arith.constant 0 : index
    %c0_20 = arith.constant 0 : index
    %42 = vector.load %arg3[%c5, %c0_19, %c0_20] : memref<9x4x128xbf16, #tpu.memory_space<vmem>>, vector<1x4x128xbf16>
    %43 = vector.shape_cast %42 : vector<1x4x128xbf16> to vector<4x128xbf16>
    %cst_21 = arith.constant dense<0.000000e+00> : vector<256x128xf32>
    %44 = tpu.matmul %41, %43, %cst_21 {dimension_numbers = #tpu.dot_dimension_numbers<[1], [0], [0], [1], [0, 0, 1, 1], [], []>} : vector<256x4xbf16>, vector<4x128xbf16>, vector<256x128xf32> -> vector<256x128xf32>
    %45 = arith.addf %38, %44 : vector<256x128xf32>
    %46 = vector.extract_strided_slice %2 {offsets = [2, 0, 0], sizes = [16, 16, 4], strides = [1, 1, 1]} : vector<18x18x4xf32> to vector<16x16x4xf32>
    %47 = vector.shape_cast %46 : vector<16x16x4xf32> to vector<256x4xf32>
    %48 = arith.truncf %47 : vector<256x4xf32> to vector<256x4xbf16>
    %c6 = arith.constant 6 : index
    %c0_22 = arith.constant 0 : index
    %c0_23 = arith.constant 0 : index
    %49 = vector.load %arg3[%c6, %c0_22, %c0_23] : memref<9x4x128xbf16, #tpu.memory_space<vmem>>, vector<1x4x128xbf16>
    %50 = vector.shape_cast %49 : vector<1x4x128xbf16> to vector<4x128xbf16>
    %cst_24 = arith.constant dense<0.000000e+00> : vector<256x128xf32>
    %51 = tpu.matmul %48, %50, %cst_24 {dimension_numbers = #tpu.dot_dimension_numbers<[1], [0], [0], [1], [0, 0, 1, 1], [], []>} : vector<256x4xbf16>, vector<4x128xbf16>, vector<256x128xf32> -> vector<256x128xf32>
    %52 = arith.addf %45, %51 : vector<256x128xf32>
    %53 = vector.extract_strided_slice %2 {offsets = [2, 1, 0], sizes = [16, 16, 4], strides = [1, 1, 1]} : vector<18x18x4xf32> to vector<16x16x4xf32>
    %54 = vector.shape_cast %53 : vector<16x16x4xf32> to vector<256x4xf32>
    %55 = arith.truncf %54 : vector<256x4xf32> to vector<256x4xbf16>
    %c7 = arith.constant 7 : index
    %c0_25 = arith.constant 0 : index
    %c0_26 = arith.constant 0 : index
    %56 = vector.load %arg3[%c7, %c0_25, %c0_26] : memref<9x4x128xbf16, #tpu.memory_space<vmem>>, vector<1x4x128xbf16>
    %57 = vector.shape_cast %56 : vector<1x4x128xbf16> to vector<4x128xbf16>
    %cst_27 = arith.constant dense<0.000000e+00> : vector<256x128xf32>
    %58 = tpu.matmul %55, %57, %cst_27 {dimension_numbers = #tpu.dot_dimension_numbers<[1], [0], [0], [1], [0, 0, 1, 1], [], []>} : vector<256x4xbf16>, vector<4x128xbf16>, vector<256x128xf32> -> vector<256x128xf32>
    %59 = arith.addf %52, %58 : vector<256x128xf32>
    %60 = vector.extract_strided_slice %2 {offsets = [2, 2, 0], sizes = [16, 16, 4], strides = [1, 1, 1]} : vector<18x18x4xf32> to vector<16x16x4xf32>
    %61 = vector.shape_cast %60 : vector<16x16x4xf32> to vector<256x4xf32>
    %62 = arith.truncf %61 : vector<256x4xf32> to vector<256x4xbf16>
    %c8 = arith.constant 8 : index
    %c0_28 = arith.constant 0 : index
    %c0_29 = arith.constant 0 : index
    %63 = vector.load %arg3[%c8, %c0_28, %c0_29] : memref<9x4x128xbf16, #tpu.memory_space<vmem>>, vector<1x4x128xbf16>
    %64 = vector.shape_cast %63 : vector<1x4x128xbf16> to vector<4x128xbf16>
    %cst_30 = arith.constant dense<0.000000e+00> : vector<256x128xf32>
    %65 = tpu.matmul %62, %64, %cst_30 {dimension_numbers = #tpu.dot_dimension_numbers<[1], [0], [0], [1], [0, 0, 1, 1], [], []>} : vector<256x4xbf16>, vector<4x128xbf16>, vector<256x128xf32> -> vector<256x128xf32>
    %66 = arith.addf %59, %65 : vector<256x128xf32>
    %c0_31 = arith.constant 0 : index
    %c0_32 = arith.constant 0 : index
    %67 = vector.load %arg4[%c0_31, %c0_32] : memref<1x128xf32, #tpu.memory_space<vmem>>, vector<1x128xf32>
    %68 = vector.broadcast %67 : vector<1x128xf32> to vector<256x128xf32>
    %69 = arith.mulf %66, %68 : vector<256x128xf32>
    %c0_33 = arith.constant 0 : index
    %c0_34 = arith.constant 0 : index
    %70 = vector.load %arg5[%c0_33, %c0_34] : memref<1x128xf32, #tpu.memory_space<vmem>>, vector<1x128xf32>
    %71 = vector.broadcast %70 : vector<1x128xf32> to vector<256x128xf32>
    %72 = arith.addf %69, %71 : vector<256x128xf32>
    %cst_35 = arith.constant 0.000000e+00 : f32
    %73 = vector.broadcast %cst_35 : f32 to vector<256x128xf32>
    %74 = arith.maximumf %72, %73 : vector<256x128xf32>
    %75 = vector.shape_cast %74 : vector<256x128xf32> to vector<16x16x128xf32>
    %c0_36 = arith.constant 0 : index
    %c0_37 = arith.constant 0 : index
    %c0_38 = arith.constant 0 : index
    %c0_39 = arith.constant 0 : index
    %76 = vector.load %arg6[%c0_36, %c0_37, %c0_38, %c0_39] : memref<1x16x16x128xf32, #tpu.memory_space<vmem>>, vector<1x16x16x128xf32>
    %77 = vector.shape_cast %76 : vector<1x16x16x128xf32> to vector<16x16x128xf32>
    %78 = vector.shape_cast %75 : vector<16x16x128xf32> to vector<1x16x16x128xf32>
    tpu.vector_store %arg6[%c0_36, %c0_37, %c0_38, %c0_39], %78 {strides = array<i32>} : memref<1x16x16x128xf32, #tpu.memory_space<vmem>>, vector<1x16x16x128xf32>,
    return
  }
  func.func @transform_0(%arg0: i32, %arg1: i32) -> (i32, i32, i32, i32) {
    %c0_i32 = arith.constant 0 : i32
    %c0_i32_0 = arith.constant 0 : i32
    %c0_i32_1 = arith.constant 0 : i32
    %c0_i32_2 = arith.constant 0 : i32
    return %arg0, %c0_i32, %c0_i32_0, %c0_i32_1 : i32, i32, i32, i32
  }
  func.func @transform_1(%arg0: i32, %arg1: i32) -> (i32, i32, i32) {
    %c0_i32 = arith.constant 0 : i32
    %c0_i32_0 = arith.constant 0 : i32
    %c0_i32_1 = arith.constant 0 : i32
    return %c0_i32, %c0_i32_0, %arg1 : i32, i32, i32
  }
  func.func @transform_2(%arg0: i32, %arg1: i32) -> (i32, i32) {
    %c0_i32 = arith.constant 0 : i32
    %c0_i32_0 = arith.constant 0 : i32
    return %c0_i32, %arg1 : i32, i32
  }
  func.func @transform_3(%arg0: i32, %arg1: i32) -> (i32, i32) {
    %c0_i32 = arith.constant 0 : i32
    %c0_i32_0 = arith.constant 0 : i32
    return %c0_i32, %arg1 : i32, i32
  }
  func.func @transform_4(%arg0: i32, %arg1: i32) -> (i32, i32, i32, i32) {
    %c0_i32 = arith.constant 0 : i32
    %c0_i32_0 = arith.constant 0 : i32
    %c0_i32_1 = arith.constant 0 : i32
    return %arg0, %c0_i32, %c0_i32_0, %arg1 : i32, i32, i32, i32
  }
}

</mosaic_0001>

<bundles_post_ra>
// kernel: conv_block_forward.1
= control target key start
LH: loop header
LB: loop body
LE: loop exit
PB: predicated region body
PF: predicated region fallthrough
CT: control target
= control target key end

     0   :  { %s3897_s15 = smov 0   ;;  %s3899_s16 = smov 0   ;;  %s4910_s0 = inlined_call_operand.vmem [shape: bf16[2,18,18,4], index: 0, kind: input, shape index: {}]   ;;  %s4911_s1 = inlined_call_operand.vmem [shape: bf16[9,4,128], index: 1, kind: input, shape index: {}]   ;;  %s4912_s2 = inlined_call_operand.vmem [shape: f32[1,128], index: 2, kind: input, shape index: {}]   ;;  %s4913_s3 = inlined_call_operand.vmem [shape: f32[1,128], index: 3, kind: input, shape index: {}]   ;;  %s4914_s4 = inlined_call_operand.vmem [shape: f32[2,16,16,128], index: 4, kind: output, shape index: {}]  }
   0x1   :  { %s3901_s17 = smov 0  }
   0x2 LB: > { %s26_s18 = sadd.s32 1, %s3866_s16  ;;  %p2881_p0 = scmp.ge.s32.totalorder %s3870_s17, 1  ;;  %s3870_s17 = sphi %s3901_s17, %s14_s17   ;;  %s3866_s16 = sphi %s3899_s16, %s4995_s16   ;;  %s3862_s15 = sphi %s3897_s15, %s4994_s15  }
   0x3   : > { %p28_p1 = scmp.ge.s32.totalorder %s26_s18, 2  ;;  %p201_p2 = scmp.lt.s32.totalorder %s3870_s17, 3 }
   0x5   : > { %s4997_s18 = smov (%p28_p1, %s26_s18), 0  ;;  %p202_p3 = pnand %p2881_p0, %p201_p2 }
   0x7   : > { %205 = sbr.rel (%p202_p3) target bundleno = 536 (0x218), region = 36 }
   0xe   : > { %v2901_v0 = vld [vmem:[%s4911_s1 + $0x2] sm:$0x3]  ;;  %vm617_vm0 = vcmask 1041408   ;;  %v3921_v1 = vld [vmem:[%s4911_s1 + $0x8] sm:$0x3]  ;;  %p240_p4 = scmp.lt.s32.totalorder %s3862_s15, 1 }
   0xf   : > { %3777 = vmatprep.subr.msk.bf16.mxu1 %vm617_vm0, %v2901_v0  ;;  %3781 = vmatprep.subr.msk.bf16.mxu0 %vm617_vm0, %v3921_v1  ;;  %v619_v2 = vsel %vm617_vm0, %v2901_v0, 0  ;;  %v3929_v3 = vsel %vm617_vm0, %v3921_v1, 0  ;;  %v388_v4 = vld [vmem:[%s4911_s1] sm:$0x3]  ;;  %v2986_v5 = vld [vmem:[%s4911_s1 + $0xa] sm:$0x3] }
  0x10   : > { %4953 = vst [vmem:[#allocation2_spill] sm:$0xff] %v3929_v3  ;;  %3214 = vmatpush3.bf16.msra.mxu1 %v619_v2  ;;  %3350 = vmatpush3.bf16.msra.mxu0 %v3929_v3  ;;  %s4999_s15 = smov (!%p240_p4, %s3862_s15), 1  ;;  %vm437_vm1 = vcmask 1046528   ;;  %vm568_vm2 = vcmask 31744   ;;  %v831_v37 = vsel %vm617_vm0, %v388_v4, 0  ;;  %v1797_v43 = vsel %vm617_vm0, %v2986_v5, 0 }
  0x11   : > { %3778 = vmatprep.subr.msk.bf16.mxu1 %vm617_vm0, %v388_v4  ;;  %3783 = vmatprep.subr.msk.bf16.mxu0 %vm617_vm0, %v2986_v5  ;;  %s3787_s27 = smul.u32 216, %s4999_s15  ;;  %v4017_v44 = vld [vmem:[%s4911_s1 + $0x4] sm:$0x3]  ;;  %v4061_v2 = vld [vmem:[%s4911_s1 + $0xc] sm:$0x3]  ;;  %vm994_vm3 = vcmask 1045504  }
  0x12   : > { %s3059_s23 = sshll.u32 %s4999_s15, 8 }
  0x13   : > { %s3946_s30 = scalar_lea.vmem %s4910_s0, %s3787_s27  ;;  %s4801_s26 = scalar_lea.vmem %s4914_s4, %s3059_s23 }
  0x14   : > { %v3949_v6 = vld [vmem:[%s3946_s30] sm:$0xff]   ;;  %v3952_v7 = vld [vmem:[%s3946_s30 + $0x8] sm:$0x1]  ;;  %v3955_v8 = vld [vmem:[%s3946_s30 + $0xc] sm:$0xff]  }
  0x15   : > { %v4917_v9 = vunpack.c.l.bf16 %v3949_v6  ;;  %v4916_v10 = vunpack.c.h.bf16 %v3949_v6  ;;  %v4915_v11 = vunpack.c.l.bf16 %v3952_v7  ;;  %v3961_v12 = vld [vmem:[%s3946_s30 + $0x14] sm:$0x1]  ;;  %v321_v13 = vunpack.c.l.bf16 %v3955_v8  ;;  %v3965_v14 = vld [vmem:[%s3946_s30 + $0x18] sm:$0xff]   ;;  %v3981_v23 = vld [vmem:[%s3946_s30 + $0x20] sm:$0x1] }
  0x16   : > { %v322_v15 = vunpack.c.h.bf16 %v3955_v8  ;;  %v323_v16 = vunpack.c.l.bf16 %v3961_v12  ;;  %v324_v20 = vunpack.c.l.bf16 %v3965_v14  ;;  %v3988_v27 = vld [vmem:[%s3946_s30 + $0x24] sm:$0xff]   ;;  %v325_v31 = vunpack.c.h.bf16 %v3965_v14  ;;  %v3997_v34 = vld [vmem:[%s3946_s30 + $0x2c] sm:$0x1]  ;;  %v4000_v35 = vld [vmem:[%s3946_s30 + $0x30] sm:$0xff]  }
  0x17   : > { %v438_v17 = vrot.slane %v4917_v9, 1  ;;  %v439_v18 = vrot.slane %v4916_v10, 1  ;;  %v441_v19 = vrot.slane %v4915_v11, 1  ;;  %v443_v21 = vrot.slane %v321_v13, 1  ;;  %v4007_v40 = vld [vmem:[%s3946_s30 + $0x38] sm:$0x1] }
  0x18   : > { %v444_v22 = vrot.slane %v322_v15, 1  ;;  %v446_v26 = vrot.slane %v323_v16, 1  ;;  %v326_v32 = vunpack.c.l.bf16 %v3981_v23  ;;  %v448_v33 = vrot.slane %v324_v20, 1  ;;  %v4028_v49 = vld [vmem:[%s3946_s30 + $0x3c] sm:$0xff]   ;;  %v4035_v54 = vld [vmem:[%s3946_s30 + $0x44] sm:$0x1] }
  0x19   : > { %v440_v24 = vsel %vm437_vm1, %v438_v17, %v439_v18  ;;  %v442_v25 = vsel %vm437_vm1, %v439_v18, %v441_v19  ;;  %v327_v38 = vunpack.c.l.bf16 %v3988_v27  ;;  %v328_v39 = vunpack.c.h.bf16 %v3988_v27  ;;  %v4038_v55 = vld [vmem:[%s3946_s30 + $0x48] sm:$0xff]   ;;  %v4056_v0 = vld [vmem:[%s3946_s30 + $0x50] sm:$0x1]  ;;  %v4072_v19 = vld [vmem:[%s3946_s30 + $0x54] sm:$0xff]  }
  0x1a   : > { %v550_v28 = vpack.c.bf16 %v442_v25, %v440_v24  ;;  %v445_v29 = vsel %vm437_vm1, %v443_v21, %v444_v22  ;;  %v447_v30 = vsel %vm437_vm1, %v444_v22, %v446_v26  ;;  %v449_v41 = vrot.slane %v325_v31, 1  ;;  %v4081_v26 = vld [vmem:[%s3946_s30 + $0x5c] sm:$0x1] }
  0x1b   : > { %v551_v36 = vpack.c.bf16 %v447_v30, %v445_v29  ;;  %v451_v42 = vrot.slane %v326_v32, 1  ;;  %v329_v45 = vunpack.c.l.bf16 %v3997_v34  ;;  %v453_v46 = vrot.slane %v327_v38, 1 }
  0x1c   : > { %3215 = vmatprep.mubr.msk.bf16.mxu1 %vm568_vm2, %v550_v28  ;;  %v454_v47 = vrot.slane %v328_v39, 1  ;;  %v330_v48 = vunpack.c.l.bf16 %v4000_v35  ;;  %v450_v50 = vsel %vm437_vm1, %v448_v33, %v449_v41  ;;  %v331_v52 = vunpack.c.h.bf16 %v4000_v35 }
  0x1d   : > { %3351 = vmatprep.mubr.msk.bf16.mxu0 %vm568_vm2, %v551_v36  ;;  %3216 = vmatmul.mubr.msk.bf16.vlgmr.msra.gmra.mrb[0].mxu1 %vm568_vm2, %v551_v36  ;;  %v452_v51 = vsel %vm437_vm1, %v449_v41, %v451_v42  ;;  %v332_v53 = vunpack.c.l.bf16 %v4007_v40  ;;  %v456_v58 = vrot.slane %v329_v45, 1  ;;  %v333_v62 = vunpack.c.l.bf16 %v4028_v49 }
  0x1e   : > { %3248 = vmatpush3.bf16.msra.mxu1 %v831_v37  ;;  %v4040_v56 = vpack.c.bf16 %v452_v51, %v450_v50  ;;  %v455_v57 = vsel %vm437_vm1, %v453_v46, %v454_v47  ;;  %v458_v59 = vrot.slane %v330_v48, 1  ;;  %v459_v60 = vrot.slane %v331_v52, 1  ;;  %v4108_v51 = vld [vmem:[%s3946_s30 + $0x60] sm:$0xff]  }
  0x1f   : > { %3779 = vmatprep.subr.msk.bf16.mxu1 %vm617_vm0, %v4017_v44  ;;  %v461_v61 = vrot.slane %v332_v53, 1  ;;  %v334_v63 = vunpack.c.h.bf16 %v4028_v49  ;;  %v457_v4 = vsel %vm437_vm1, %v454_v47, %v456_v58  ;;  %v4933_v5 = vunpack.c.l.bf16 %v4035_v54  ;;  %v4115_v58 = vld [vmem:[%s3946_s30 + $0x68] sm:$0x1] }
  0x20   : > { %3352 = vmatmul.mubr.msk.bf16.vlgmr.msra.gmra.mrb[0].mxu0 %vm568_vm2, %v4040_v56  ;;  %3219 = vmatprep.mubr.msk.bf16.mxu1 %vm568_vm2, %v4040_v56  ;;  %v4932_v17 = vunpack.c.l.bf16 %v4038_v55  ;;  %v4927_v18 = vunpack.c.h.bf16 %v4038_v55  ;;  %v4074_v21 = vpack.c.bf16 %v457_v4, %v455_v57  ;;  %v460_v22 = vsel %vm437_vm1, %v458_v59, %v459_v60 }
  0x21   : > { %3384 = vmatpush3.bf16.msra.mxu0 %v1797_v43  ;;  %v462_v24 = vsel %vm437_vm1, %v459_v60, %v461_v61  ;;  %v463_v25 = vrot.slane %v333_v62, 1  ;;  %v464_v29 = vrot.slane %v334_v63, 1  ;;  %v466_v30 = vrot.slane %v4933_v5, 1 }
  0x22   : > { %v4083_v28 = vpack.c.bf16 %v462_v24, %v460_v22  ;;  %v4924_v33 = vunpack.c.l.bf16 %v4056_v0  ;;  %3784 = vmatprep.subr.msk.bf16.mxu0 %vm617_vm0, %v4061_v2  ;;  %3355 = vmatprep.mubr.msk.bf16.mxu0 %vm568_vm2, %v4074_v21  ;;  %v468_v36 = vrot.slane %v4932_v17, 1  ;;  %v469_v37 = vrot.slane %v4927_v18, 1 }
  0x23   : > { %v4923_v41 = vunpack.c.l.bf16 %v4072_v19  ;;  %v4922_v42 = vunpack.c.h.bf16 %v4072_v19  ;;  %v465_v43 = vsel %vm437_vm1, %v463_v25, %v464_v29  ;;  %v467_v46 = vsel %vm437_vm1, %v464_v29, %v466_v30  ;;  %v4133_v30 = vld [vmem:[%s3946_s30 + $0x6c] sm:$0xff]  }
  0x24   : > { %v471_v47 = vrot.slane %v4924_v33, 1  ;;  %v4918_v50 = vunpack.c.l.bf16 %v4081_v26  ;;  %v4112_v57 = vpack.c.bf16 %v467_v46, %v465_v43  ;;  %v4921_v4 = vunpack.c.l.bf16 %v4108_v51 }
  0x25   : > { %3220 = vmatmul.mubr.msk.bf16.gmra.mrb[4].mxu1 %vm568_vm2, %v4074_v21  ;;  %v473_v59 = vrot.slane %v4923_v41, 1  ;;  %v474_v60 = vrot.slane %v4922_v42, 1  ;;  %v470_v22 = vsel %vm437_vm1, %v468_v36, %v469_v37  ;;  %v4920_v25 = vunpack.c.h.bf16 %v4108_v51  ;;  %v4140_v36 = vld [vmem:[%s3946_s30 + $0x74] sm:$0x1] }
  0x26   : > { %3223 = vmatprep.mubr.msk.bf16.mxu1 %vm568_vm2, %v4083_v28  ;;  %v476_v61 = vrot.slane %v4918_v50, 1  ;;  %v472_v24 = vsel %vm437_vm1, %v469_v37, %v471_v47  ;;  %v4919_v29 = vunpack.c.l.bf16 %v4115_v58  ;;  %v1000_v43 = vrot.slane %v321_v13, 2  ;;  %v4151_v50 = vld [vmem:[%s3946_s30 + $0x78] sm:$0xff]   ;;  %v4154_v13 = vld [vmem:[%s3946_s30 + $0x80] sm:$0x1] }
  0x27   : > { %v475_v46 = vsel %vm437_vm1, %v473_v59, %v474_v60  ;;  %v1001_v37 = vrot.slane %v322_v15, 2  ;;  %v1003_v47 = vrot.slane %v323_v16, 2  ;;  %v4146_v10 = vpack.c.bf16 %v472_v24, %v470_v22 }
  0x28   : > { %3356 = vmatmul.mubr.msk.bf16.gmra.mrb[4].mxu0 %vm568_vm2, %v4083_v28  ;;  %v477_v11 = vsel %vm437_vm1, %v474_v60, %v476_v61  ;;  %v478_v9 = vrot.slane %v4921_v4, 1  ;;  %v479_v59 = vrot.slane %v4920_v25, 1  ;;  %v481_v15 = vrot.slane %v4919_v29, 1 }
  0x29   : > { %3359 = vmatprep.mubr.msk.bf16.mxu0 %vm568_vm2, %v4112_v57  ;;  %v4926_v12 = vunpack.c.l.bf16 %v4133_v30  ;;  %v4925_v16 = vunpack.c.h.bf16 %v4133_v30  ;;  %v4166_v60 = vpack.c.bf16 %v477_v11, %v475_v46  ;;  %v4931_v61 = vunpack.c.l.bf16 %v4140_v36 }
  0x2a   : > { %v1005_v22 = vrot.slane %v324_v20, 2  ;;  %v4929_v24 = vunpack.c.l.bf16 %v4151_v50  ;;  %v4928_v29 = vunpack.c.h.bf16 %v4151_v50  ;;  %v4930_v25 = vunpack.c.l.bf16 %v4154_v13 }
  0x2b   : > { %v1006_v4 = vrot.slane %v325_v31, 2  ;;  %v1008_v42 = vrot.slane %v326_v32, 2  ;;  %v1002_v11 = vsel %vm994_vm3, %v1000_v43, %v1001_v37  ;;  %v1004_v46 = vsel %vm994_vm3, %v1001_v37, %v1003_v47  ;;  %v4189_v31 = vld [vmem:[%s3946_s30 + $0x84] sm:$0xff]   ;;  %v4192_v32 = vld [vmem:[%s3946_s30 + $0x8c] sm:$0x1] }
  0x2c   : > { %v480_v20 = vsel %vm437_vm1, %v478_v9, %v479_v59  ;;  %v482_v41 = vsel %vm437_vm1, %v479_v59, %v481_v15  ;;  %v483_v33 = vrot.slane %v4926_v12, 1  ;;  %v484_v23 = vrot.slane %v4925_v16, 1  ;;  %v4207_v15 = vld [vmem:[%s3946_s30 + $0x90] sm:$0xff]  }
  0x2d   : > { %3224 = vmatmul.mubr.msk.bf16.gmra.mrb[8].mxu1 %vm568_vm2, %v4112_v57  ;;  %v486_v43 = vrot.slane %v4931_v61, 1  ;;  %v4198_v9 = vpack.c.bf16 %v1004_v46, %v1002_v11  ;;  %v488_v37 = vrot.slane %v4929_v24, 1  ;;  %v489_v47 = vrot.slane %v4928_v29, 1  ;;  %v4215_v46 = vld [vmem:[%s3946_s30 + $0x98] sm:$0x1] }
  0x2e   : > { %3227 = vmatprep.mubr.msk.bf16.mxu1 %vm568_vm2, %v4146_v10  ;;  %v491_v59 = vrot.slane %v4930_v25, 1  ;;  %v4209_v16 = vpack.c.bf16 %v482_v41, %v480_v20  ;;  %v4939_v12 = vunpack.c.l.bf16 %v4189_v31  ;;  %v4938_v18 = vunpack.c.h.bf16 %v4189_v31 }
  0x2f   : > { %v4934_v11 = vunpack.c.l.bf16 %v4192_v32  ;;  %v485_v29 = vsel %vm437_vm1, %v483_v33, %v484_v23  ;;  %v1007_v24 = vsel %vm994_vm3, %v1005_v22, %v1006_v4  ;;  %v1009_v25 = vsel %vm994_vm3, %v1006_v4, %v1008_v42 }
  0x30   : > { %3360 = vmatmul.mubr.msk.bf16.gmra.mrb[8].mxu0 %vm568_vm2, %v4146_v10  ;;  %v1010_v41 = vrot.slane %v327_v38, 2  ;;  %v487_v20 = vsel %vm437_vm1, %v484_v23, %v486_v43  ;;  %v1011_v61 = vrot.slane %v328_v39, 2  ;;  %v4937_v17 = vunpack.c.l.bf16 %v4207_v15 }
  0x31   : > { %3363 = vmatprep.mubr.msk.bf16.mxu0 %vm568_vm2, %v4166_v60  ;;  %v4935_v5 = vunpack.c.h.bf16 %v4207_v15  ;;  %v490_v33 = vsel %vm437_vm1, %v488_v37, %v489_v47  ;;  %v492_v42 = vsel %vm437_vm1, %v489_v47, %v491_v59  ;;  %v1013_v38 = vrot.slane %v329_v45, 2 }
  0x32   : > { %v4936_v4 = vunpack.c.l.bf16 %v4215_v46  ;;  %v493_v22 = vrot.slane %v4939_v12, 1  ;;  %v494_v39 = vrot.slane %v4938_v18, 1  ;;  %v496_v23 = vrot.slane %v4934_v11, 1  ;;  %v4258_v11 = vld [vmem:[%s3946_s30 + $0x9c] sm:$0xff]  }
  0x33   : > { %v4244_v43 = vpack.c.bf16 %v487_v20, %v485_v29  ;;  %v4246_v37 = vpack.c.bf16 %v1009_v25, %v1007_v24  ;;  %v4250_v34 = vpack.c.bf16 %v492_v42, %v490_v33  ;;  %v1012_v45 = vsel %vm994_vm3, %v1010_v41, %v1011_v61  ;;  %v4268_v41 = vld [vmem:[%s3946_s30 + $0xa4] sm:$0x1] }
  0x34   : > { %v498_v47 = vrot.slane %v4937_v17, 1  ;;  %v499_v59 = vrot.slane %v4935_v5, 1  ;;  %v1014_v25 = vsel %vm994_vm3, %v1011_v61, %v1013_v38  ;;  %v1015_v29 = vrot.slane %v330_v48, 2  ;;  %v4277_v38 = vld [vmem:[%s3946_s30 + $0xa8] sm:$0xff]   ;;  %v4280_v48 = vld [vmem:[%s3946_s30 + $0xb0] sm:$0x1] }
  0x35   : > { %3228 = vmatmul.mubr.msk.bf16.gmra.mrb[12].mxu1 %vm568_vm2, %v4166_v60  ;;  %v1016_v24 = vrot.slane %v331_v52, 2  ;;  %v501_v20 = vrot.slane %v4936_v4, 1  ;;  %v495_v33 = vsel %vm437_vm1, %v493_v22, %v494_v39  ;;  %v497_v42 = vsel %vm437_vm1, %v494_v39, %v496_v23 }
  0x36   : > { %3231 = vmatprep.mubr.msk.bf16.mxu1 %vm568_vm2, %v4209_v16  ;;  %v1018_v5 = vrot.slane %v332_v53, 2  ;;  %v1020_v61 = vrot.slane %v333_v62, 2  ;;  %v1021_v52 = vrot.slane %v334_v63, 2  ;;  %v4954_v22 = vunpack.c.l.bf16 %v4035_v54 }
  0x37   : > { %v4945_v39 = vunpack.c.l.bf16 %v4258_v11  ;;  %v4944_v40 = vunpack.c.h.bf16 %v4258_v11  ;;  %v1999_v53 = vsel %vm617_vm0, %v4061_v2, 0  ;;  %v4294_v62 = vpack.c.bf16 %v1014_v25, %v1012_v45 }
  0x38   : > { %3364 = vmatmul.mubr.msk.bf16.gmra.mrb[12].mxu0 %vm568_vm2, %v4209_v16  ;;  %v1023_v4 = vrot.slane %v4954_v22, 2  ;;  %v500_v23 = vsel %vm437_vm1, %v498_v47, %v499_v59  ;;  %v4942_v17 = vunpack.c.l.bf16 %v4268_v41  ;;  %v502_v63 = vsel %vm437_vm1, %v499_v59, %v501_v20  ;;  %v4309_v47 = vld [vmem:[%s4911_s1 + $0xe] sm:$0x3] }
  0x39   : > { %3385 = vmatprep.mubr.msk.bf16.mxu0 %vm568_vm2, %v4198_v9  ;;  %v4940_v54 = vunpack.c.l.bf16 %v4277_v38  ;;  %v4941_v22 = vunpack.c.h.bf16 %v4277_v38  ;;  %v4943_v18 = vunpack.c.l.bf16 %v4280_v48  ;;  %v4302_v12 = vpack.c.bf16 %v497_v42, %v495_v33 }
  0x3a   : > { %v1017_v2 = vsel %vm994_vm3, %v1015_v29, %v1016_v24  ;;  %v1019_v45 = vsel %vm994_vm3, %v1016_v24, %v1018_v5  ;;  %v1022_v59 = vsel %vm994_vm3, %v1020_v61, %v1021_v52  ;;  %v1024_v25 = vsel %vm994_vm3, %v1021_v52, %v1023_v4  ;;  %v4334_v52 = vld [vmem:[%s3946_s30 + $0xb4] sm:$0xff]  }
  0x3b   : > { %4955 = vst [vmem:[#allocation3_spill] sm:$0xff] %v4302_v12  ;;  %v503_v20 = vrot.slane %v4945_v39, 1  ;;  %v504_v29 = vrot.slane %v4944_v40, 1  ;;  %v4321_v5 = vpack.c.bf16 %v502_v63, %v500_v23  ;;  %v506_v24 = vrot.slane %v4942_v17, 1 }
  0x3c   : > { %v4325_v33 = vpack.c.bf16 %v1019_v45, %v1017_v2  ;;  %v508_v4 = vrot.slane %v4940_v54, 1  ;;  %v509_v42 = vrot.slane %v4941_v22, 1  ;;  %v511_v61 = vrot.slane %v4943_v18, 1 }
  0x3d   : > { %3232 = vmatmul.mubr.msk.bf16.gmra.mrb[16].mxu1 %vm568_vm2, %v4244_v43  ;;  %v4341_v23 = vpack.c.bf16 %v1024_v25, %v1022_v59  ;;  %v4956_v63 = vunpack.c.l.bf16 %v4038_v55  ;;  %v4957_v45 = vunpack.c.h.bf16 %v4038_v55  ;;  %v4958_v22 = vunpack.c.l.bf16 %v4056_v0 }
  0x3e   : > { %3235 = vmatprep.mubr.msk.bf16.mxu1 %vm568_vm2, %v4250_v34  ;;  %v505_v18 = vsel %vm437_vm1, %v503_v20, %v504_v29  ;;  %v4959_v40 = vunpack.c.l.bf16 %v4072_v19  ;;  %v4960_v59 = vunpack.c.h.bf16 %v4072_v19  ;;  %v4961_v3 = vunpack.c.l.bf16 %v4081_v26 }
  0x3f   : > { %v1025_v2 = vrot.slane %v4956_v63, 2  ;;  %v1026_v54 = vrot.slane %v4957_v45, 2  ;;  %v1028_v17 = vrot.slane %v4958_v22, 2  ;;  %v507_v0 = vsel %vm437_vm1, %v504_v29, %v506_v24 }
  0x40   : > { %3386 = vmatmul.mubr.msk.bf16.vlgmr.msra.gmra.mrb[0].mxu0 %vm568_vm2, %v4246_v37  ;;  %v1030_v39 = vrot.slane %v4959_v40, 2  ;;  %v1031_v25 = vrot.slane %v4960_v59, 2  ;;  %v1033_v63 = vrot.slane %v4961_v3, 2  ;;  %v4950_v22 = vunpack.c.l.bf16 %v4334_v52 }
  0x41   : > { %3418 = vmatpush3.bf16.msra.mxu0 %v1999_v53  ;;  %3389 = vmatprep.mubr.msk.bf16.mxu0 %vm568_vm2, %v4294_v62  ;;  %v4337_v53 = vld [vmem:[%s3946_s30 + $0xbc] sm:$0x1]  ;;  %v4949_v45 = vunpack.c.h.bf16 %v4334_v52  ;;  %v512_v40 = vsel %vm437_vm1, %v509_v42, %v511_v61  ;;  %v1027_v59 = vsel %vm994_vm3, %v1025_v2, %v1026_v54  ;;  %v4369_v3 = vpack.c.bf16 %v507_v0, %v505_v18 }
  0x42   : > { %3785 = vmatprep.subr.msk.bf16.mxu0 %vm617_vm0, %v4309_v47  ;;  %v1029_v26 = vsel %vm994_vm3, %v1026_v54, %v1028_v17  ;;  %v1032_v29 = vsel %vm994_vm3, %v1030_v39, %v1031_v25  ;;  %v1034_v24 = vsel %vm994_vm3, %v1031_v25, %v1033_v63  ;;  %v4963_v18 = vunpack.c.l.bf16 %v4337_v53 }
  0x43   : > { %v4386_v17 = vpack.c.bf16 %v1029_v26, %v1027_v59  ;;  %v4388_v39 = vpack.c.bf16 %v1034_v24, %v1032_v29  ;;  %v4964_v54 = vunpack.c.l.bf16 %v4108_v51  ;;  %v4965_v63 = vunpack.c.h.bf16 %v4108_v51 }
  0x44   : > { %v516_v61 = vrot.slane %v4963_v18, 1  ;;  %v4967_v59 = vunpack.c.l.bf16 %v4133_v30  ;;  %v4968_v29 = vunpack.c.h.bf16 %v4133_v30 }
  0x45   : > { %3236 = vmatmul.mubr.msk.bf16.gmra.mrb[20].mxu1 %vm568_vm2, %v4302_v12  ;;  %v510_v12 = vsel %vm437_vm1, %v508_v4, %v509_v42  ;;  %v513_v4 = vrot.slane %v4950_v22, 1  ;;  %v514_v42 = vrot.slane %v4949_v45, 1  ;;  %v1036_v0 = vrot.slane %v4965_v63, 2 }
  0x46   : > { %3239 = vmatprep.mubr.msk.bf16.mxu1 %vm568_vm2, %v4321_v5  ;;  %v4376_v20 = vpack.c.bf16 %v512_v40, %v510_v12  ;;  %v1035_v12 = vrot.slane %v4964_v54, 2  ;;  %v4966_v40 = vunpack.c.l.bf16 %v4115_v58  ;;  %v1040_v26 = vrot.slane %v4967_v59, 2 }
  0x47   : > { %v515_v2 = vsel %vm437_vm1, %v513_v4, %v514_v42  ;;  %v517_v25 = vsel %vm437_vm1, %v514_v42, %v516_v61  ;;  %v1041_v24 = vrot.slane %v4968_v29, 2  ;;  %v4969_v54 = vunpack.c.l.bf16 %v4140_v36 }
  0x48   : > { %3390 = vmatmul.mubr.msk.bf16.gmra.mrb[4].mxu0 %vm568_vm2, %v4325_v33  ;;  %4962 = vst [vmem:[#allocation4_spill] sm:$0xff] %v4376_v20  ;;  %v1038_v18 = vrot.slane %v4966_v40, 2  ;;  %v4970_v22 = vunpack.c.l.bf16 %v3949_v6  ;;  %v4971_v42 = vunpack.c.h.bf16 %v3949_v6  ;;  %v4972_v63 = vunpack.c.l.bf16 %v3952_v7 }
  0x49   : > { %3393 = vmatprep.mubr.msk.bf16.mxu0 %vm568_vm2, %v4341_v23  ;;  %v1043_v45 = vrot.slane %v4969_v54, 2  ;;  %v4414_v58 = vpack.c.bf16 %v517_v25, %v515_v2  ;;  %v1037_v36 = vsel %vm994_vm3, %v1035_v12, %v1036_v0  ;;  %v4973_v2 = vunpack.c.l.bf16 %v4151_v50 }
  0x4a   : > { %v995_v4 = vrot.slane %v4970_v22, 2  ;;  %v996_v61 = vrot.slane %v4971_v42, 2  ;;  %v1039_v40 = vsel %vm994_vm3, %v1036_v0, %v1038_v18  ;;  %v1042_v22 = vsel %vm994_vm3, %v1040_v26, %v1041_v24 }
  0x4b   : > { %v1044_v59 = vsel %vm994_vm3, %v1041_v24, %v1043_v45  ;;  %v4427_v7 = vpack.c.bf16 %v1039_v40, %v1037_v36  ;;  %v1045_v25 = vrot.slane %v4973_v2, 2  ;;  %v4974_v45 = vunpack.c.h.bf16 %v4151_v50 }
  0x4c   : > { %v4423_v29 = vsel %vm994_vm3, %v995_v4, %v996_v61  ;;  %v4436_v12 = vpack.c.bf16 %v1044_v59, %v1042_v22  ;;  %v4975_v18 = vunpack.c.l.bf16 %v4154_v13  ;;  %v4976_v4 = vunpack.c.l.bf16 %v4189_v31 }
  0x4d   : > { %3240 = vmatmul.mubr.msk.bf16.gmra.mrb[24].mxu1 %vm568_vm2, %v4369_v3  ;;  %v1046_v0 = vrot.slane %v4974_v45, 2  ;;  %v1174_v40 = vsel %vm617_vm0, %v4017_v44, 0  ;;  %v4979_v44 = vunpack.c.l.bf16 %v4207_v15 }
  0x4e   : > { %3243 = vmatprep.mubr.msk.bf16.mxu1 %vm568_vm2, %v4376_v20  ;;  %v998_v20 = vrot.slane %v4972_v63, 2  ;;  %v1048_v26 = vrot.slane %v4975_v18, 2  ;;  %v1050_v42 = vrot.slane %v4976_v4, 2  ;;  %v4978_v63 = vunpack.c.l.bf16 %v4192_v32  ;;  %v4463_v32 = vld [vmem:[%s4911_s1 + $0x6] sm:$0x3] }
  0x4f   : > { %v1047_v13 = vsel %vm994_vm3, %v1045_v25, %v1046_v0  ;;  %v1055_v45 = vrot.slane %v4979_v44, 2 }
  0x50   : > { %3394 = vmatmul.mubr.msk.bf16.gmra.mrb[8].mxu0 %vm568_vm2, %v4386_v17  ;;  %v4432_v54 = vsel %vm994_vm3, %v996_v61, %v998_v20  ;;  %v4977_v20 = vunpack.c.h.bf16 %v4189_v31  ;;  %v1049_v36 = vsel %vm994_vm3, %v1046_v0, %v1048_v26  ;;  %v4980_v0 = vunpack.c.h.bf16 %v4207_v15 }
  0x51   : > { %3397 = vmatprep.mubr.msk.bf16.mxu0 %vm568_vm2, %v4388_v39  ;;  %v1107_v24 = vpack.c.bf16 %v4432_v54, %v4423_v29  ;;  %v4467_v2 = vpack.c.bf16 %v1049_v36, %v1047_v13  ;;  %v4981_v26 = vunpack.c.l.bf16 %v4215_v46  ;;  %v317_v54 = vld [vmem:[%s3946_s30 + $0xd4] sm:$0x1] }
  0x52   : > { %v1051_v61 = vrot.slane %v4977_v20, 2  ;;  %v1056_v18 = vrot.slane %v4980_v0, 2  ;;  %v4986_v0 = vunpack.c.h.bf16 %v4277_v38 }
  0x53   : > { %v1058_v4 = vrot.slane %v4981_v26, 2 }
  0x54   : > { %v1052_v22 = vsel %vm994_vm3, %v1050_v42, %v1051_v61  ;;  %v4982_v42 = vunpack.c.l.bf16 %v4258_v11  ;;  %v1057_v46 = vsel %vm994_vm3, %v1055_v45, %v1056_v18  ;;  %v1066_v26 = vrot.slane %v4986_v0, 2 }
  0x55   : > { %3244 = vmatmul.mubr.msk.bf16.gmra.mrb[28].mxu1 %vm568_vm2, %v4414_v58  ;;  %v1059_v36 = vsel %vm994_vm3, %v1056_v18, %v1058_v4  ;;  %v4987_v18 = vunpack.c.l.bf16 %v4280_v48 }
  0x56   : > { %3249 = vmatprep.mubr.msk.bf16.mxu1 %vm568_vm2, %v3949_v6  ;;  %v1053_v6 = vrot.slane %v4978_v63, 2  ;;  %v1060_v20 = vrot.slane %v4982_v42, 2  ;;  %v4988_v42 = vunpack.c.l.bf16 %v4334_v52 }
  0x57   : > { %v1068_v4 = vrot.slane %v4987_v18, 2 }
  0x58   : > { %3398 = vmatmul.mubr.msk.bf16.gmra.mrb[12].mxu0 %vm568_vm2, %v4427_v7  ;;  %v1054_v59 = vsel %vm994_vm3, %v1051_v61, %v1053_v6  ;;  %v4983_v61 = vunpack.c.h.bf16 %v4258_v11  ;;  %v4984_v6 = vunpack.c.l.bf16 %v4268_v41 }
  0x59   : > { %3401 = vmatprep.mubr.msk.bf16.mxu0 %vm568_vm2, %v4436_v12  ;;  %v4471_v25 = vpack.c.bf16 %v1054_v59, %v1052_v22  ;;  %v4497_v22 = vpack.c.bf16 %v1059_v36, %v1057_v46  ;;  %v4985_v59 = vunpack.c.l.bf16 %v4277_v38  ;;  %v4516_v46 = vld [vmem:[%s3946_s30 + $0xc0] sm:$0xff]   ;;  %v314_v36 = vld [vmem:[%s3946_s30 + $0xc8] sm:$0x1]  ;;  %v1069_v48 = vsel %vm994_vm3, %v1066_v26, %v1068_v4 }
  0x5a   : > { %v1061_v63 = vrot.slane %v4983_v61, 2  ;;  %v1063_v13 = vrot.slane %v4984_v6, 2  ;;  %v4989_v61 = vunpack.c.h.bf16 %v4334_v52  ;;  %v4990_v6 = vunpack.c.l.bf16 %v4337_v53 }
  0x5b   : > { %v1065_v44 = vrot.slane %v4985_v59, 2  ;;  %v367_v59 = vunpack.c.h.bf16 %v4516_v46  ;;  %v368_v0 = vunpack.c.l.bf16 %v314_v36 }
  0x5c   : > { %v1064_v41 = vsel %vm994_vm3, %v1061_v63, %v1063_v13  ;;  %v1073_v13 = vrot.slane %v4990_v6, 2 }
  0x5d   : > { %3250 = vmatmul.mubr.msk.bf16.vlgmr.msra.gmra.mrb[0].mxu1 %vm568_vm2, %v3955_v8  ;;  %v1784_v4 = vrot.slane %v367_v59, 2  ;;  %v1577_v36 = vrot.slane %v368_v0, 1 }
  0x5e   : > { %3282 = vmatpush3.bf16.msra.mxu1 %v1174_v40  ;;  %3253 = vmatprep.mubr.msk.bf16.mxu1 %vm568_vm2, %v3965_v14  ;;  %v1062_v40 = vsel %vm994_vm3, %v1060_v20, %v1061_v63  ;;  %v1070_v20 = vrot.slane %v4988_v42, 2  ;;  %v1071_v63 = vrot.slane %v4989_v61, 2  ;;  %v1786_v61 = vrot.slane %v368_v0, 2 }
  0x5f   : > { %3780 = vmatprep.subr.msk.bf16.mxu1 %vm617_vm0, %v4463_v32  ;;  %v4505_v45 = vpack.c.bf16 %v1064_v41, %v1062_v40  ;;  %v1067_v40 = vsel %vm994_vm3, %v1065_v44, %v1066_v26  ;;  %v366_v41 = vunpack.c.l.bf16 %v4516_v46  ;;  %v371_v0 = vunpack.c.l.bf16 %v317_v54 }
  0x60   : > { %3402 = vmatmul.mubr.msk.bf16.gmra.mrb[16].mxu0 %vm568_vm2, %v4467_v2  ;;  %v1072_v53 = vsel %vm994_vm3, %v1070_v20, %v1071_v63  ;;  %v1074_v18 = vsel %vm994_vm3, %v1071_v63, %v1073_v13  ;;  %v4531_v42 = vpack.c.bf16 %v1069_v48, %v1067_v40  ;;  %v1575_v20 = vrot.slane %v367_v59, 1  ;;  %v3038_v59 = vld [vmem:[%s4911_s1 + $0x10] sm:$0x3] }
  0x61   : > { %3405 = vmatprep.mubr.msk.bf16.mxu0 %vm568_vm2, %v4471_v25  ;;  %v4535_v44 = vpack.c.bf16 %v1074_v18, %v1072_v53  ;;  %v1783_v26 = vrot.slane %v366_v41, 2  ;;  %v1574_v6 = vrot.slane %v366_v41, 1  ;;  %v1787_v13 = vsel %vm994_vm3, %v1784_v4, %v1786_v61 }
  0x62   : > { %v1578_v48 = vsel %vm437_vm1, %v1575_v20, %v1577_v36  ;;  %v2211_v41 = vsel %vm617_vm0, %v4309_v47, 0  ;;  %v1376_v47 = vsel %vm617_vm0, %v4463_v32, 0 }
  0x63   : > { %v1785_v63 = vsel %vm994_vm3, %v1783_v26, %v1784_v4  ;;  %v1576_v40 = vsel %vm437_vm1, %v1574_v6, %v1575_v20  ;;  %v2409_v26 = vrot.slane %v371_v0, 2  ;;  %v2420_v20 = vsel %vm617_vm0, %v3038_v59, 0 }
  0x64   : > { %v4545_v53 = vpack.c.bf16 %v1578_v48, %v1576_v40  ;;  %v4549_v18 = vpack.c.bf16 %v1787_v13, %v1785_v63 }
  0x65   : > { %3254 = vmatmul.mubr.msk.bf16.gmra.mrb[4].mxu1 %vm568_vm2, %v3988_v27 }
  0x66   : > { %3257 = vmatprep.mubr.msk.bf16.mxu1 %vm568_vm2, %v4000_v35 }
  0x68   : > { %3406 = vmatmul.mubr.msk.bf16.gmra.mrb[20].mxu0 %vm568_vm2, %v4497_v22 }
  0x69   : > { %3409 = vmatprep.mubr.msk.bf16.mxu0 %vm568_vm2, %v4505_v45 }
  0x6d   : > { %3258 = vmatmul.mubr.msk.bf16.gmra.mrb[8].mxu1 %vm568_vm2, %v4028_v49 }
  0x6e   : > { %3261 = vmatprep.mubr.msk.bf16.mxu1 %vm568_vm2, %v4038_v55 }
  0x70   : > { %3410 = vmatmul.mubr.msk.bf16.gmra.mrb[24].mxu0 %vm568_vm2, %v4531_v42 }
  0x71   : > { %3413 = vmatprep.mubr.msk.bf16.mxu0 %vm568_vm2, %v4535_v44 }
  0x75   : > { %3262 = vmatmul.mubr.msk.bf16.gmra.mrb[12].mxu1 %vm568_vm2, %v4072_v19 }
  0x76   : > { %3265 = vmatprep.mubr.msk.bf16.mxu1 %vm568_vm2, %v4108_v51 }
  0x78   : > { %3414 = vmatmul.mubr.msk.bf16.gmra.mrb[28].mxu0 %vm568_vm2, %v4549_v18 }
  0x79   : > { %3419 = vmatprep.mubr.msk.bf16.mxu0 %vm568_vm2, %v3965_v14 }
  0x7d   : > { %3266 = vmatmul.mubr.msk.bf16.gmra.mrb[16].mxu1 %vm568_vm2, %v4133_v30 }
  0x7e   : > { %3269 = vmatprep.mubr.msk.bf16.mxu1 %vm568_vm2, %v4151_v50 }
  0x80   : > { %3420 = vmatmul.mubr.msk.bf16.vlgmr.msra.gmra.mrb[0].mxu0 %vm568_vm2, %v3988_v27 }
  0x81   : > { %3452 = vmatpush3.bf16.msra.mxu0 %v2211_v41  ;;  %3423 = vmatprep.mubr.msk.bf16.mxu0 %vm568_vm2, %v4000_v35 }
  0x82   : > { %3786 = vmatprep.subr.msk.bf16.mxu0 %vm617_vm0, %v3038_v59 }
  0x85   : > { %3270 = vmatmul.mubr.msk.bf16.gmra.mrb[20].mxu1 %vm568_vm2, %v4189_v31 }
  0x86   : > { %3273 = vmatprep.mubr.msk.bf16.mxu1 %vm568_vm2, %v4207_v15 }
  0x88   : > { %3424 = vmatmul.mubr.msk.bf16.gmra.mrb[4].mxu0 %vm568_vm2, %v4028_v49 }
  0x89   : > { %3427 = vmatprep.mubr.msk.bf16.mxu0 %vm568_vm2, %v4038_v55 }
  0x8d   : > { %3274 = vmatmul.mubr.msk.bf16.gmra.mrb[24].mxu1 %vm568_vm2, %v4258_v11 }
  0x8e   : > { %3277 = vmatprep.mubr.msk.bf16.mxu1 %vm568_vm2, %v4277_v38 }
  0x90   : > { %3428 = vmatmul.mubr.msk.bf16.gmra.mrb[8].mxu0 %vm568_vm2, %v4072_v19 }
  0x91   : > { %3431 = vmatprep.mubr.msk.bf16.mxu0 %vm568_vm2, %v4108_v51 }
  0x95   : > { %3278 = vmatmul.mubr.msk.bf16.gmra.mrb[28].mxu1 %vm568_vm2, %v4334_v52 }
  0x96   : > { %3283 = vmatprep.mubr.msk.bf16.mxu1 %vm568_vm2, %v1107_v24 }
  0x98   : > { %3432 = vmatmul.mubr.msk.bf16.gmra.mrb[12].mxu0 %vm568_vm2, %v4133_v30 }
  0x99   : > { %3435 = vmatprep.mubr.msk.bf16.mxu0 %vm568_vm2, %v4151_v50 }
  0x9d   : > { %3284 = vmatmul.mubr.msk.bf16.vlgmr.msra.gmra.mrb[0].mxu1 %vm568_vm2, %v4198_v9 }
  0x9e   : > { %3316 = vmatpush3.bf16.msra.mxu1 %v1376_v47  ;;  %3287 = vmatprep.mubr.msk.bf16.mxu1 %vm568_vm2, %v4246_v37 }
  0x9f   : > { %3782 = vmatprep.subr.msk.bf16.mxu1 %vm617_vm0, %v3921_v1  ;;  %v315_v1 = vld [vmem:[%s3946_s30 + $0xcc] sm:$0xff]  }
  0xa0   : > { %3436 = vmatmul.mubr.msk.bf16.gmra.mrb[16].mxu0 %vm568_vm2, %v4189_v31  ;;  %v369_v9 = vunpack.c.l.bf16 %v315_v1  ;;  %v370_v29 = vunpack.c.h.bf16 %v315_v1 }
  0xa1   : > { %3439 = vmatprep.mubr.msk.bf16.mxu0 %vm568_vm2, %v4207_v15 }
  0xa2   : > { %v2406_v24 = vrot.slane %v369_v9, 2  ;;  %v2407_v32 = vrot.slane %v370_v29, 2 }
  0xa4   : > { %v4630_v4 = vsel %vm994_vm3, %v2406_v24, %v2407_v32  ;;  %v4635_v61 = vsel %vm994_vm3, %v2407_v32, %v2409_v26 }
  0xa5   : > { %3288 = vmatmul.mubr.msk.bf16.gmra.mrb[4].mxu1 %vm568_vm2, %v4294_v62  ;;  %v2413_v6 = vpack.c.bf16 %v4635_v61, %v4630_v4 }
  0xa6   : > { %3291 = vmatprep.mubr.msk.bf16.mxu1 %vm568_vm2, %v4325_v33 }
  0xa8   : > { %3440 = vmatmul.mubr.msk.bf16.gmra.mrb[20].mxu0 %vm568_vm2, %v4258_v11 }
  0xa9   : > { %3443 = vmatprep.mubr.msk.bf16.mxu0 %vm568_vm2, %v4277_v38 }
  0xad   : > { %3292 = vmatmul.mubr.msk.bf16.gmra.mrb[8].mxu1 %vm568_vm2, %v4341_v23 }
  0xae   : > { %3295 = vmatprep.mubr.msk.bf16.mxu1 %vm568_vm2, %v4386_v17 }
  0xb0   : > { %3444 = vmatmul.mubr.msk.bf16.gmra.mrb[24].mxu0 %vm568_vm2, %v4334_v52 }
  0xb1   : > { %3447 = vmatprep.mubr.msk.bf16.mxu0 %vm568_vm2, %v4516_v46 }
  0xb5   : > { %3296 = vmatmul.mubr.msk.bf16.gmra.mrb[12].mxu1 %vm568_vm2, %v4388_v39 }
  0xb6   : > { %3299 = vmatprep.mubr.msk.bf16.mxu1 %vm568_vm2, %v4427_v7 }
  0xb8   : > { %3448 = vmatmul.mubr.msk.bf16.gmra.mrb[28].mxu0 %vm568_vm2, %v315_v1 }
  0xb9   : > { %3453 = vmatprep.mubr.msk.bf16.mxu0 %vm568_vm2, %v4040_v56  ;;  %v4992_v56 = vld [vmem:[#allocation3_spill] sm:$0xff] }
  0xbd   : > { %3300 = vmatmul.mubr.msk.bf16.gmra.mrb[16].mxu1 %vm568_vm2, %v4436_v12 }
  0xbe   : > { %3303 = vmatprep.mubr.msk.bf16.mxu1 %vm568_vm2, %v4467_v2 }
  0xc0   : > { %3454 = vmatmul.mubr.msk.bf16.vlgmr.msra.gmra.mrb[0].mxu0 %vm568_vm2, %v4074_v21  ;;  %v2200_v21 = vrot.slane %v371_v0, 1 }
  0xc1   : > { %3486 = vmatpush3.bf16.msra.mxu0 %v2420_v20  ;;  %3457 = vmatprep.mubr.msk.bf16.mxu0 %vm568_vm2, %v4083_v28 }
  0xc5   : > { %3304 = vmatmul.mubr.msk.bf16.gmra.mrb[20].mxu1 %vm568_vm2, %v4471_v25 }
  0xc6   : > { %3307 = vmatprep.mubr.msk.bf16.mxu1 %vm568_vm2, %v4497_v22 }
  0xc8   : > { %3458 = vmatmul.mubr.msk.bf16.gmra.mrb[4].mxu0 %vm568_vm2, %v4112_v57 }
  0xc9   : > { %3461 = vmatprep.mubr.msk.bf16.mxu0 %vm568_vm2, %v4146_v10  ;;  %v4991_v10 = vld [vmem:[#allocation2_spill] sm:$0xff] }
  0xcd   : > { %3308 = vmatmul.mubr.msk.bf16.gmra.mrb[24].mxu1 %vm568_vm2, %v4505_v45 }
  0xce   : > { %3311 = vmatprep.mubr.msk.bf16.mxu1 %vm568_vm2, %v4531_v42 }
  0xd0   : > { %3462 = vmatmul.mubr.msk.bf16.gmra.mrb[8].mxu0 %vm568_vm2, %v4166_v60 }
  0xd1   : > { %3465 = vmatprep.mubr.msk.bf16.mxu0 %vm568_vm2, %v4209_v16 }
  0xd5   : > { %3312 = vmatmul.mubr.msk.bf16.gmra.mrb[28].mxu1 %vm568_vm2, %v4535_v44 }
  0xd6   : > { %3317 = vmatprep.mubr.msk.bf16.mxu1 %vm568_vm2, %v3955_v8  ;;  %v4993_v8 = vld [vmem:[#allocation4_spill] sm:$0xff] }
  0xd8   : > { %3466 = vmatmul.mubr.msk.bf16.gmra.mrb[12].mxu0 %vm568_vm2, %v4244_v43 }
  0xd9   : > { %3469 = vmatprep.mubr.msk.bf16.mxu0 %vm568_vm2, %v4250_v34 }
  0xdd   : > { %3318 = vmatmul.mubr.msk.bf16.vlgmr.msra.gmra.mrb[0].mxu1 %vm568_vm2, %v3965_v14  ;;  %v2197_v14 = vrot.slane %v369_v9, 1 }
  0xde   : > { %3520 = vmatpush3.bf16.msra.mxu1 %v4991_v10  ;;  %3321 = vmatprep.mubr.msk.bf16.mxu1 %vm568_vm2, %v3988_v27  ;;  %v2198_v27 = vrot.slane %v370_v29, 1 }
  0xe0   : > { %3470 = vmatmul.mubr.msk.bf16.gmra.mrb[16].mxu0 %vm568_vm2, %v4992_v56 }
  0xe1   : > { %3473 = vmatprep.mubr.msk.bf16.mxu0 %vm568_vm2, %v4321_v5 }
  0xe5   : > { %3322 = vmatmul.mubr.msk.bf16.gmra.mrb[4].mxu1 %vm568_vm2, %v4000_v35  ;;  %v2199_v35 = vsel %vm437_vm1, %v2197_v14, %v2198_v27 }
  0xe6   : > { %3325 = vmatprep.mubr.msk.bf16.mxu1 %vm568_vm2, %v4028_v49  ;;  %v2201_v49 = vsel %vm437_vm1, %v2198_v27, %v2200_v21 }
  0xe8   : > { %3474 = vmatmul.mubr.msk.bf16.gmra.mrb[20].mxu0 %vm568_vm2, %v4369_v3 }
  0xe9   : > { %3477 = vmatprep.mubr.msk.bf16.mxu0 %vm568_vm2, %v4993_v8 }
  0xed   : > { %3326 = vmatmul.mubr.msk.bf16.gmra.mrb[8].mxu1 %vm568_vm2, %v4038_v55  ;;  %v2204_v55 = vpack.c.bf16 %v2201_v49, %v2199_v35 }
  0xee   : > { %3329 = vmatprep.mubr.msk.bf16.mxu1 %vm568_vm2, %v4072_v19 }
  0xf0   : > { %3478 = vmatmul.mubr.msk.bf16.gmra.mrb[24].mxu0 %vm568_vm2, %v4414_v58 }
  0xf1   : > { %3481 = vmatprep.mubr.msk.bf16.mxu0 %vm568_vm2, %v4545_v53 }
  0xf5   : > { %3330 = vmatmul.mubr.msk.bf16.gmra.mrb[12].mxu1 %vm568_vm2, %v4108_v51 }
  0xf6   : > { %3333 = vmatprep.mubr.msk.bf16.mxu1 %vm568_vm2, %v4133_v30 }
  0xf8   : > { %3482 = vmatmul.mubr.msk.bf16.gmra.mrb[28].mxu0 %vm568_vm2, %v2204_v55 }
  0xf9   : > { %3487 = vmatprep.mubr.msk.bf16.mxu0 %vm568_vm2, %v4246_v37 }
  0xfd   : > { %3334 = vmatmul.mubr.msk.bf16.gmra.mrb[16].mxu1 %vm568_vm2, %v4151_v50 }
  0xfe   : > { %3337 = vmatprep.mubr.msk.bf16.mxu1 %vm568_vm2, %v4189_v31 }
 0x100   : > { %3488 = vmatmul.mubr.msk.bf16.vlgmr.msra.gmra.mrb[0].mxu0 %vm568_vm2, %v4294_v62 }
 0x101   : > { %3491 = vmatprep.mubr.msk.bf16.mxu0 %vm568_vm2, %v4325_v33  ;;  %v4786_v33 = vld [vmem:[%s4912_s2] ss:$0 sm:$0xff] }
 0x105   : > { %3338 = vmatmul.mubr.msk.bf16.gmra.mrb[20].mxu1 %vm568_vm2, %v4207_v15 }
 0x106   : > { %3341 = vmatprep.mubr.msk.bf16.mxu1 %vm568_vm2, %v4258_v11 }
 0x108   : > { %3492 = vmatmul.mubr.msk.bf16.gmra.mrb[4].mxu0 %vm568_vm2, %v4341_v23 }
 0x109   : > { %3495 = vmatprep.mubr.msk.bf16.mxu0 %vm568_vm2, %v4386_v17 }
 0x10d   : > { %3342 = vmatmul.mubr.msk.bf16.gmra.mrb[24].mxu1 %vm568_vm2, %v4277_v38 }
 0x10e   : > { %3345 = vmatprep.mubr.msk.bf16.mxu1 %vm568_vm2, %v4334_v52 }
 0x110   : > { %3496 = vmatmul.mubr.msk.bf16.gmra.mrb[8].mxu0 %vm568_vm2, %v4388_v39 }
 0x111   : > { %3499 = vmatprep.mubr.msk.bf16.mxu0 %vm568_vm2, %v4427_v7 }
 0x115   : > { %3346 = vmatmul.mubr.msk.bf16.gmra.mrb[28].mxu1 %vm568_vm2, %v4516_v46 }
 0x116   : > { %3367 = vmatprep.mubr.msk.bf16.mxu1 %vm568_vm2, %v4244_v43 }
 0x118   : > { %3500 = vmatmul.mubr.msk.bf16.gmra.mrb[12].mxu0 %vm568_vm2, %v4436_v12 }
 0x119   : > { %3503 = vmatprep.mubr.msk.bf16.mxu0 %vm568_vm2, %v4467_v2 }
 0x11d   : > { %3368 = vmatmul.mubr.msk.bf16.vlgmr.msra.gmra.mrb[16].mxu1 %vm568_vm2, %v4250_v34 }
 0x11e   : > { %3371 = vmatprep.mubr.msk.bf16.mxu1 %vm568_vm2, %v4992_v56 }
 0x120   : > { %3504 = vmatmul.mubr.msk.bf16.gmra.mrb[16].mxu0 %vm568_vm2, %v4471_v25 }
 0x121   : > { %3507 = vmatprep.mubr.msk.bf16.mxu0 %vm568_vm2, %v4497_v22 }
 0x125   : > { %3372 = vmatmul.mubr.msk.bf16.gmra.mrb[20].mxu1 %vm568_vm2, %v4321_v5 }
 0x126   : > { %3375 = vmatprep.mubr.msk.bf16.mxu1 %vm568_vm2, %v4369_v3  ;;  %v4791_v3 = vld [vmem:[%s4913_s3] ss:$0 sm:$0xff] }
 0x128   : > { %3508 = vmatmul.mubr.msk.bf16.gmra.mrb[20].mxu0 %vm568_vm2, %v4505_v45 }
 0x129   : > { %3511 = vmatprep.mubr.msk.bf16.mxu0 %vm568_vm2, %v4531_v42 }
 0x12d   : > { %3376 = vmatmul.mubr.msk.bf16.gmra.mrb[24].mxu1 %vm568_vm2, %v4993_v8 }
 0x12e   : > { %3379 = vmatprep.mubr.msk.bf16.mxu1 %vm568_vm2, %v4414_v58 }
 0x130   : > { %3512 = vmatmul.mubr.msk.bf16.gmra.mrb[24].mxu0 %vm568_vm2, %v4535_v44 }
 0x131   : > { %3515 = vmatprep.mubr.msk.bf16.mxu0 %vm568_vm2, %v4549_v18 }
 0x135   : > { %3380 = vmatmul.mubr.msk.bf16.gmra.mrb[28].mxu1 %vm568_vm2, %v4545_v53 }
 0x138   : > { %3516 = vmatmul.mubr.msk.bf16.gmra.mrb[28].mxu0 %vm568_vm2, %v2413_v6 }
 0x1b0   : > { %v3319_v19 = vpop.f32.mrb[0].mxu1 }
 0x1b1   : > { %v1412_v28 = vpop.f32.mrb[1].mxu1 }
 0x1b2   : > { %v3320_v50 = vpop.f32.mrb[2].mxu1 }
 0x1b3   : > { %v1415_v51 = vpop.f32.mrb[3].mxu1 }
 0x1b8   : > { %v3323_v57 = vpop.f32.mrb[4].mxu1 }
 0x1b9   : > { %v1428_v30 = vpop.f32.mrb[5].mxu1 }
 0x1ba   : > { %v3324_v16 = vpop.f32.mrb[6].mxu1 }
 0x1bb   : > { %v1431_v60 = vpop.f32.mrb[7].mxu1 }
 0x1c0   : > { %v3327_v31 = vpop.f32.mrb[8].mxu1 }
 0x1c1   : > { %v1444_v15 = vpop.f32.mrb[9].mxu1 }
 0x1c2   : > { %v4771_v11 = vpop.f32.mrb[10].mxu1 }
 0x1c3   : > { %v4773_v43 = vpop.f32.mrb[11].mxu1 }
 0x1c8   : > { %v4775_v37 = vpop.f32.mrb[12].mxu1 }
 0x1c9   : > { %v4777_v34 = vpop.f32.mrb[13].mxu1 }
 0x1ca   : > { %v4779_v38 = vpop.f32.mrb[14].mxu1 }
 0x1cb   : > { %v4781_v62 = vpop.f32.mrb[15].mxu1 }
 0x1d3   : > { %v3489_v5 = vpop.f32.mrb[0].mxu0 }
 0x1d4   : > { %v3521_v52 = vadd.f32 %v3489_v5, %v3319_v19  ;;  %v2456_v23 = vpop.f32.mrb[1].mxu0 }
 0x1d5   : > { %v3522_v17 = vadd.f32 %v2456_v23, %v1412_v28  ;;  %v3490_v39 = vpop.f32.mrb[2].mxu0 }
 0x1d6   : > { %v2624_v58 = vmul.f32 %v3521_v52, %v4786_v33  ;;  %v3523_v7 = vadd.f32 %v3490_v39, %v3320_v50  ;;  %v2459_v12 = vpop.f32.mrb[3].mxu0 }
 0x1d7   : > { %v2622_v2 = vmul.f32 %v3522_v17, %v4786_v33  ;;  %v3524_v25 = vadd.f32 %v2459_v12, %v1415_v51 }
 0x1d8   : > { %v2663_v22 = vadd.f32 %v4791_v3, %v2624_v58  ;;  %v2625_v45 = vmul.f32 %v3523_v7, %v4786_v33 }
 0x1d9   : > { %v2661_v46 = vadd.f32 %v4791_v3, %v2622_v2  ;;  %v2623_v42 = vmul.f32 %v3524_v25, %v4786_v33 }
 0x1da   : > { %v2695_v44 = vmax.f32 %v2663_v22, 0.0  ;;  %v2664_v36 = vadd.f32 %v4791_v3, %v2625_v45 }
 0x1db   : > { %v2693_v63 = vmax.f32 %v2661_v46, 0.0  ;;  %v2662_v13 = vadd.f32 %v4791_v3, %v2623_v42  ;;  %v3493_v40 = vpop.f32.mrb[4].mxu0 }
 0x1dc   : > { %2727 = vst [vmem:[%s4801_s26 + $0x10] sm:$0xff] %v2695_v44  ;;  %v2696_v48 = vmax.f32 %v2664_v36, 0.0  ;;  %v3525_v53 = vadd.f32 %v3493_v40, %v3323_v57  ;;  %v2472_v18 = vpop.f32.mrb[5].mxu0 }
 0x1dd   : > { %2725 = vst [vmem:[%s4801_s26] sm:$0xff] %v2693_v63  ;;  %v2694_v41 = vmax.f32 %v2662_v13, 0.0  ;;  %v3526_v59 = vadd.f32 %v2472_v18, %v1428_v30  ;;  %v3494_v47 = vpop.f32.mrb[6].mxu0 }
 0x1de   : > { %2728 = vst [vmem:[%s4801_s26 + $0x18] sm:$0xff] %v2696_v48  ;;  %v2628_v1 = vmul.f32 %v3525_v53, %v4786_v33  ;;  %v3527_v9 = vadd.f32 %v3494_v47, %v3324_v16  ;;  %v2475_v29 = vpop.f32.mrb[7].mxu0 }
 0x1df   : > { %2726 = vst [vmem:[%s4801_s26 + $0x8] sm:$0xff] %v2694_v41  ;;  %v2626_v54 = vmul.f32 %v3526_v59, %v4786_v33  ;;  %v3528_v24 = vadd.f32 %v2475_v29, %v1431_v60 }
 0x1e0   : > { %v2667_v32 = vadd.f32 %v4791_v3, %v2628_v1  ;;  %v2629_v0 = vmul.f32 %v3527_v9, %v4786_v33 }
 0x1e1   : > { %v2665_v26 = vadd.f32 %v4791_v3, %v2626_v54  ;;  %v2627_v4 = vmul.f32 %v3528_v24, %v4786_v33 }
 0x1e2   : > { %v2699_v61 = vmax.f32 %v2667_v32, 0.0  ;;  %v2668_v6 = vadd.f32 %v4791_v3, %v2629_v0 }
 0x1e3   : > { %v2697_v20 = vmax.f32 %v2665_v26, 0.0  ;;  %v2666_v10 = vadd.f32 %v4791_v3, %v2627_v4  ;;  %v3497_v56 = vpop.f32.mrb[8].mxu0 }
 0x1e4   : > { %2731 = vst [vmem:[%s4801_s26 + $0x30] sm:$0xff] %v2699_v61  ;;  %v2700_v8 = vmax.f32 %v2668_v6, 0.0  ;;  %v3529_v14 = vadd.f32 %v3497_v56, %v3327_v31  ;;  %v2488_v27 = vpop.f32.mrb[9].mxu0 }
 0x1e5   : > { %2729 = vst [vmem:[%s4801_s26 + $0x20] sm:$0xff] %v2697_v20  ;;  %v2698_v21 = vmax.f32 %v2666_v10, 0.0  ;;  %v3530_v35 = vadd.f32 %v2488_v27, %v1444_v15  ;;  %v3498_v49 = vpop.f32.mrb[10].mxu0 }
 0x1e6   : > { %2732 = vst [vmem:[%s4801_s26 + $0x38] sm:$0xff] %v2700_v8  ;;  %v2632_v55 = vmul.f32 %v3529_v14, %v4786_v33  ;;  %v3531_v19 = vadd.f32 %v3498_v49, %v4771_v11  ;;  %v2491_v28 = vpop.f32.mrb[11].mxu0 }
 0x1e7   : > { %2730 = vst [vmem:[%s4801_s26 + $0x28] sm:$0xff] %v2698_v21  ;;  %v2630_v50 = vmul.f32 %v3530_v35, %v4786_v33  ;;  %v3532_v51 = vadd.f32 %v2491_v28, %v4773_v43 }
 0x1e8   : > { %v2671_v57 = vadd.f32 %v4791_v3, %v2632_v55  ;;  %v2633_v30 = vmul.f32 %v3531_v19, %v4786_v33 }
 0x1e9   : > { %v2669_v16 = vadd.f32 %v4791_v3, %v2630_v50  ;;  %v2631_v60 = vmul.f32 %v3532_v51, %v4786_v33 }
 0x1ea   : > { %v2703_v31 = vmax.f32 %v2671_v57, 0.0  ;;  %v2672_v15 = vadd.f32 %v4791_v3, %v2633_v30 }
 0x1eb   : > { %v2701_v11 = vmax.f32 %v2669_v16, 0.0  ;;  %v2670_v5 = vadd.f32 %v4791_v3, %v2631_v60  ;;  %v3501_v52 = vpop.f32.mrb[12].mxu0 }
 0x1ec   : > { %2735 = vst [vmem:[%s4801_s26 + $0x50] sm:$0xff] %v2703_v31  ;;  %v2704_v23 = vmax.f32 %v2672_v15, 0.0  ;;  %v3533_v43 = vadd.f32 %v3501_v52, %v4775_v37  ;;  %v2504_v17 = vpop.f32.mrb[13].mxu0 }
 0x1ed   : > { %2733 = vst [vmem:[%s4801_s26 + $0x40] sm:$0xff] %v2701_v11  ;;  %v2702_v39 = vmax.f32 %v2670_v5, 0.0  ;;  %v3534_v58 = vadd.f32 %v2504_v17, %v4777_v34  ;;  %v3502_v7 = vpop.f32.mrb[14].mxu0 }
 0x1ee   : > { %2736 = vst [vmem:[%s4801_s26 + $0x58] sm:$0xff] %v2704_v23  ;;  %v2636_v12 = vmul.f32 %v3533_v43, %v4786_v33  ;;  %v3535_v2 = vadd.f32 %v3502_v7, %v4779_v38  ;;  %v2507_v25 = vpop.f32.mrb[15].mxu0 }
 0x1ef   : > { %2734 = vst [vmem:[%s4801_s26 + $0x48] sm:$0xff] %v2702_v39  ;;  %v2634_v22 = vmul.f32 %v3534_v58, %v4786_v33  ;;  %v3536_v45 = vadd.f32 %v2507_v25, %v4781_v62 }
 0x1f0   : > { %v3369_v46 = vpop.f32.mrb[16].mxu1  ;;  %v2675_v37 = vadd.f32 %v4791_v3, %v2636_v12  ;;  %v2637_v42 = vmul.f32 %v3535_v2, %v4786_v33 }
 0x1f1   : > { %v1688_v34 = vpop.f32.mrb[17].mxu1  ;;  %v2673_v44 = vadd.f32 %v4791_v3, %v2634_v22  ;;  %v2635_v36 = vmul.f32 %v3536_v45, %v4786_v33 }
 0x1f2   : > { %v3370_v38 = vpop.f32.mrb[18].mxu1  ;;  %v2707_v63 = vmax.f32 %v2675_v37, 0.0  ;;  %v2676_v13 = vadd.f32 %v4791_v3, %v2637_v42 }
 0x1f3   : > { %v1691_v40 = vpop.f32.mrb[19].mxu1  ;;  %v2705_v48 = vmax.f32 %v2673_v44, 0.0  ;;  %v2674_v62 = vadd.f32 %v4791_v3, %v2635_v36  ;;  %v3505_v53 = vpop.f32.mrb[16].mxu0 }
 0x1f4   : > { %2739 = vst [vmem:[%s4801_s26 + $0x70] sm:$0xff] %v2707_v63  ;;  %v2708_v18 = vmax.f32 %v2676_v13, 0.0  ;;  %v3537_v41 = vadd.f32 %v3505_v53, %v3369_v46  ;;  %v2520_v59 = vpop.f32.mrb[17].mxu0 }
 0x1f5   : > { %2737 = vst [vmem:[%s4801_s26 + $0x60] sm:$0xff] %v2705_v48  ;;  %v2706_v47 = vmax.f32 %v2674_v62, 0.0  ;;  %v3538_v1 = vadd.f32 %v2520_v59, %v1688_v34  ;;  %v3506_v9 = vpop.f32.mrb[18].mxu0 }
 0x1f6   : > { %2740 = vst [vmem:[%s4801_s26 + $0x78] sm:$0xff] %v2708_v18  ;;  %v2640_v29 = vmul.f32 %v3537_v41, %v4786_v33  ;;  %v3539_v54 = vadd.f32 %v3506_v9, %v3370_v38  ;;  %v2523_v24 = vpop.f32.mrb[19].mxu0 }
 0x1f7   : > { %2738 = vst [vmem:[%s4801_s26 + $0x68] sm:$0xff] %v2706_v47  ;;  %v2638_v32 = vmul.f32 %v3538_v1, %v4786_v33  ;;  %v3540_v0 = vadd.f32 %v2523_v24, %v1691_v40 }
 0x1f8   : > { %v3373_v26 = vpop.f32.mrb[20].mxu1  ;;  %v2679_v4 = vadd.f32 %v4791_v3, %v2640_v29  ;;  %v2641_v61 = vmul.f32 %v3539_v54, %v4786_v33 }
 0x1f9   : > { %v1704_v6 = vpop.f32.mrb[21].mxu1  ;;  %v2677_v20 = vadd.f32 %v4791_v3, %v2638_v32  ;;  %v2639_v10 = vmul.f32 %v3540_v0, %v4786_v33 }
 0x1fa   : > { %v3374_v56 = vpop.f32.mrb[22].mxu1  ;;  %v2711_v8 = vmax.f32 %v2679_v4, 0.0  ;;  %v2680_v14 = vadd.f32 %v4791_v3, %v2641_v61 }
 0x1fb   : > { %v1707_v27 = vpop.f32.mrb[23].mxu1  ;;  %v2709_v21 = vmax.f32 %v2677_v20, 0.0  ;;  %v2678_v35 = vadd.f32 %v4791_v3, %v2639_v10  ;;  %v3509_v49 = vpop.f32.mrb[20].mxu0 }
 0x1fc   : > { %2743 = vst [vmem:[%s4801_s26 + $0x90] sm:$0xff] %v2711_v8  ;;  %v2712_v55 = vmax.f32 %v2680_v14, 0.0  ;;  %v3541_v19 = vadd.f32 %v3509_v49, %v3373_v26  ;;  %v2536_v28 = vpop.f32.mrb[21].mxu0 }
 0x1fd   : > { %2741 = vst [vmem:[%s4801_s26 + $0x80] sm:$0xff] %v2709_v21  ;;  %v2710_v50 = vmax.f32 %v2678_v35, 0.0  ;;  %v3542_v51 = vadd.f32 %v2536_v28, %v1704_v6  ;;  %v3510_v57 = vpop.f32.mrb[22].mxu0 }
 0x1fe   : > { %2744 = vst [vmem:[%s4801_s26 + $0x98] sm:$0xff] %v2712_v55  ;;  %v2644_v30 = vmul.f32 %v3541_v19, %v4786_v33  ;;  %v3543_v16 = vadd.f32 %v3510_v57, %v3374_v56  ;;  %v2539_v60 = vpop.f32.mrb[23].mxu0 }
 0x1ff   : > { %2742 = vst [vmem:[%s4801_s26 + $0x88] sm:$0xff] %v2710_v50  ;;  %v2642_v31 = vmul.f32 %v3542_v51, %v4786_v33  ;;  %v3544_v15 = vadd.f32 %v2539_v60, %v1707_v27 }
 0x200   : > { %v3377_v11 = vpop.f32.mrb[24].mxu1  ;;  %v2683_v5 = vadd.f32 %v4791_v3, %v2644_v30  ;;  %v2645_v52 = vmul.f32 %v3543_v16, %v4786_v33 }
 0x201   : > { %v1720_v23 = vpop.f32.mrb[25].mxu1  ;;  %v2681_v43 = vadd.f32 %v4791_v3, %v2642_v31  ;;  %v2643_v17 = vmul.f32 %v3544_v15, %v4786_v33 }
 0x202   : > { %v3378_v39 = vpop.f32.mrb[26].mxu1  ;;  %v2715_v58 = vmax.f32 %v2683_v5, 0.0  ;;  %v2684_v7 = vadd.f32 %v4791_v3, %v2645_v52 }
 0x203   : > { %v1723_v12 = vpop.f32.mrb[27].mxu1  ;;  %v2713_v2 = vmax.f32 %v2681_v43, 0.0  ;;  %v2682_v25 = vadd.f32 %v4791_v3, %v2643_v17  ;;  %v3513_v22 = vpop.f32.mrb[24].mxu0 }
 0x204   : > { %2747 = vst [vmem:[%s4801_s26 + $0xb0] sm:$0xff] %v2715_v58  ;;  %v2716_v45 = vmax.f32 %v2684_v7, 0.0  ;;  %v3545_v46 = vadd.f32 %v3513_v22, %v3377_v11  ;;  %v2552_v37 = vpop.f32.mrb[25].mxu0 }
 0x205   : > { %2745 = vst [vmem:[%s4801_s26 + $0xa0] sm:$0xff] %v2713_v2  ;;  %v2714_v42 = vmax.f32 %v2682_v25, 0.0  ;;  %v3546_v34 = vadd.f32 %v2552_v37, %v1720_v23  ;;  %v3514_v44 = vpop.f32.mrb[26].mxu0 }
 0x206   : > { %2748 = vst [vmem:[%s4801_s26 + $0xb8] sm:$0xff] %v2716_v45  ;;  %v2648_v36 = vmul.f32 %v3545_v46, %v4786_v33  ;;  %v3547_v38 = vadd.f32 %v3514_v44, %v3378_v39  ;;  %v2555_v63 = vpop.f32.mrb[27].mxu0 }
 0x207   : > { %2746 = vst [vmem:[%s4801_s26 + $0xa8] sm:$0xff] %v2714_v42  ;;  %v2646_v13 = vmul.f32 %v3546_v34, %v4786_v33  ;;  %v3548_v40 = vadd.f32 %v2555_v63, %v1723_v12 }
 0x208   : > { %v3381_v48 = vpop.f32.mrb[28].mxu1  ;;  %v2687_v62 = vadd.f32 %v4791_v3, %v2648_v36  ;;  %v2649_v53 = vmul.f32 %v3547_v38, %v4786_v33 }
 0x209   : > { %v1736_v18 = vpop.f32.mrb[29].mxu1  ;;  %v2685_v41 = vadd.f32 %v4791_v3, %v2646_v13  ;;  %v2647_v59 = vmul.f32 %v3548_v40, %v4786_v33 }
 0x20a   : > { %v3382_v47 = vpop.f32.mrb[30].mxu1  ;;  %v2719_v1 = vmax.f32 %v2687_v62, 0.0  ;;  %v2688_v9 = vadd.f32 %v4791_v3, %v2649_v53 }
 0x20b   : > { %v1739_v29 = vpop.f32.mrb[31].mxu1  ;;  %v2717_v54 = vmax.f32 %v2685_v41, 0.0  ;;  %v2686_v24 = vadd.f32 %v4791_v3, %v2647_v59  ;;  %v3517_v32 = vpop.f32.mrb[28].mxu0 }
 0x20c   : > { %2751 = vst [vmem:[%s4801_s26 + $0xd0] sm:$0xff] %v2719_v1  ;;  %v2720_v0 = vmax.f32 %v2688_v9, 0.0  ;;  %v3549_v26 = vadd.f32 %v3517_v32, %v3381_v48  ;;  %v2568_v4 = vpop.f32.mrb[29].mxu0 }
 0x20d   : > { %2749 = vst [vmem:[%s4801_s26 + $0xc0] sm:$0xff] %v2717_v54  ;;  %v2718_v61 = vmax.f32 %v2686_v24, 0.0  ;;  %v3550_v6 = vadd.f32 %v2568_v4, %v1736_v18  ;;  %v3518_v20 = vpop.f32.mrb[30].mxu0 }
 0x20e   : > { %2752 = vst [vmem:[%s4801_s26 + $0xd8] sm:$0xff] %v2720_v0  ;;  %v2652_v10 = vmul.f32 %v3549_v26, %v4786_v33  ;;  %v3551_v56 = vadd.f32 %v3518_v20, %v3382_v47  ;;  %v2571_v8 = vpop.f32.mrb[31].mxu0 }
 0x20f   : > { %2750 = vst [vmem:[%s4801_s26 + $0xc8] sm:$0xff] %v2718_v61  ;;  %v2650_v14 = vmul.f32 %v3550_v6, %v4786_v33  ;;  %v3552_v27 = vadd.f32 %v2571_v8, %v1739_v29 }
 0x210   : > { %v2691_v21 = vadd.f32 %v4791_v3, %v2652_v10  ;;  %v2653_v35 = vmul.f32 %v3551_v56, %v4786_v33 }
 0x211   : > { %v2689_v49 = vadd.f32 %v4791_v3, %v2650_v14  ;;  %v2651_v55 = vmul.f32 %v3552_v27, %v4786_v33 }
 0x212   : > { %v2723_v19 = vmax.f32 %v2691_v21, 0.0  ;;  %v2692_v28 = vadd.f32 %v4791_v3, %v2653_v35 }
 0x213   : > { %v2721_v50 = vmax.f32 %v2689_v49, 0.0  ;;  %v2690_v51 = vadd.f32 %v4791_v3, %v2651_v55 }
 0x214   : > { %2755 = vst [vmem:[%s4801_s26 + $0xf0] sm:$0xff] %v2723_v19  ;;  %v2724_v57 = vmax.f32 %v2692_v28, 0.0 }
 0x215   : > { %2753 = vst [vmem:[%s4801_s26 + $0xe0] sm:$0xff] %v2721_v50  ;;  %v2722_v30 = vmax.f32 %v2690_v51, 0.0 }
 0x216   : > { %2756 = vst [vmem:[%s4801_s26 + $0xf8] sm:$0xff] %v2724_v57 }
 0x217   : > { %2754 = vst [vmem:[%s4801_s26 + $0xe8] sm:$0xff] %v2722_v30 }
 0x218 PF: > { %s14_s17 = sadd.s32 1, %s3870_s17   ;;  %s4994_s15 = smov %s3866_s16 }
 0x219   : > { %p11_p5 = scmp.ge.s32.totalorder %s14_s17, 4   ;;  %s4995_s16 = smov %s4997_s18 }
 0x21b   :  { %13 = sbr.rel (!%p11_p5) target bundleno = 2 (0x2), region = 83 }

</bundles_post_ra>
